<compile_context>
chip_gen: v6e
topology: v6e:2x2x1
jax: 0.10.0
libtpu: 0.0.40
codegen_flags: <defaults>
</compile_context>

<pallas_src>
import functools

import jax
import jax.numpy as jnp
from jax.experimental import pallas as pl
from jax.experimental.pallas import tpu as pltpu

INPUT_SIZE = 784
HIDDEN = 128
NUM_CLASSES = 10
LANES = 128


def _dam_mask(mu, beta, alpha):
    # mask = relu(tanh(alpha**2 * (mu + beta)))  (>= 0), shape (1, HIDDEN), f32
    return jnp.maximum(jnp.tanh((alpha * alpha) * (mu + beta)), 0.0)


def dam_net_kernel(x_ref, w1_ref, b1_ref, w2_ref, b2_ref, w3_ref, b3_ref, o_ref):
    """One batch tile: three MXU matmuls (bf16 in, f32 acc), ReLU/bias in f32.

    The DAM masks are already folded into w*/b* in the wrapper (valid because
    mask >= 0, so relu(x@W + b) * m == relu(x@(W*m) + b*m))."""
    x = x_ref[...]                                                 # (TB, 896) bf16

    h1 = jnp.dot(x, w1_ref[...], preferred_element_type=jnp.float32)
    h1 = jnp.maximum(h1 + b1_ref[...], 0.0)                        # (TB, 128) f32

    h2 = jnp.dot(h1.astype(jnp.bfloat16), w2_ref[...],
                 preferred_element_type=jnp.float32)
    h2 = jnp.maximum(h2 + b2_ref[...], 0.0)                        # (TB, 128) f32

    out = jnp.dot(h2.astype(jnp.bfloat16), w3_ref[...],
                  preferred_element_type=jnp.float32)
    o_ref[...] = out + b3_ref[...]                                 # (TB, 128) f32


def _fold_and_pad_params(params):
    """Fold DAM masks into the Linears, pad K 784->896 and out 10->128 lanes,
    cast matmul operands to bf16 (biases stay f32)."""
    m1 = _dam_mask(params["mu1"], params["beta1"], params["alpha1"])   # (1, 128)
    m2 = _dam_mask(params["mu2"], params["beta2"], params["alpha2"])   # (1, 128)

    k_pad = LANES * pl.cdiv(INPUT_SIZE, LANES)        # 896
    n_pad = LANES * pl.cdiv(NUM_CLASSES, LANES)       # 128

    w1 = jnp.pad(params["w1"] * m1, ((0, k_pad - INPUT_SIZE), (0, 0)))
    b1 = params["b1"] * m1
    w2 = params["w2"] * m2
    b2 = params["b2"] * m2
    w3 = jnp.pad(params["w3"], ((0, 0), (0, n_pad - NUM_CLASSES)))
    b3 = jnp.pad(params["b3"], ((0, 0), (0, n_pad - NUM_CLASSES)))

    return dict(
        w1=w1.astype(jnp.bfloat16), b1=b1,
        w2=w2.astype(jnp.bfloat16), b2=b2,
        w3=w3.astype(jnp.bfloat16), b3=b3,
        k_pad=k_pad, n_pad=n_pad,
    )


@functools.partial(jax.jit, static_argnames=("tb",))
def dam_net_forward(x, params, tb=256):
    """x: (B, 784) f32 -> logits (B, NUM_CLASSES) f32."""
    B = x.shape[0]
    p = _fold_and_pad_params(params)
    k_pad, n_pad = p["k_pad"], p["n_pad"]

    # Pad batch to a multiple of the tile; padded rows are sliced off at the end.
    pb = tb * pl.cdiv(B, tb)
    x_p = jnp.pad(x, ((0, pb - B), (0, k_pad - INPUT_SIZE))).astype(jnp.bfloat16)

    def const(shape):
        # Constant block index -> weight stays VMEM-resident across grid steps.
        return pl.BlockSpec(shape, lambda i: (0, 0))

    out = pl.pallas_call(
        dam_net_kernel,
        out_shape=jax.ShapeDtypeStruct((pb, n_pad), jnp.float32),
        grid=(pb // tb,),
        in_specs=[
            pl.BlockSpec((tb, k_pad), lambda i: (i, 0)),     # streamed activations
            const((k_pad, HIDDEN)), const((1, HIDDEN)),      # Linear1 (mask-folded)
            const((HIDDEN, HIDDEN)), const((1, HIDDEN)),     # Linear2 (mask-folded)
            const((HIDDEN, n_pad)), const((1, n_pad)),       # Linear3 (lane-padded)
        ],
        out_specs=pl.BlockSpec((tb, n_pad), lambda i: (i, 0)),
        compiler_params=pltpu.CompilerParams(
            dimension_semantics=("parallel",),   # v7x: shard batch over both TCs
            vmem_limit_bytes=16 << 20,           # working set is ~2-3 MiB @ TB=256
        ),
    )(x_p, p["w1"], p["b1"], p["w2"], p["b2"], p["w3"], p["b3"])

    return out[:B, :NUM_CLASSES]


def init_params(key):
    """Deterministic synthetic parameters matching the PyTorch module shapes."""
    ks = jax.random.split(key, 6)

    def linear(kw, kb, fan_in, fan_out):
        bound = 1.0 / jnp.sqrt(fan_in)
        w = jax.random.uniform(kw, (fan_in, fan_out), jnp.float32, -bound, bound)
        b = jax.random.uniform(kb, (1, fan_out), jnp.float32, -bound, bound)
        return w, b

    w1, b1 = linear(ks[0], ks[1], INPUT_SIZE, HIDDEN)
    w2, b2 = linear(ks[2], ks[3], HIDDEN, HIDDEN)
    w3, b3 = linear(ks[4], ks[5], HIDDEN, NUM_CLASSES)

    # DAM parameters: mu = arange(D)/D*5, beta = 1, alpha = 1  (as in __init__)
    mu = (jnp.arange(HIDDEN, dtype=jnp.float32) / HIDDEN * 5.0).reshape(1, HIDDEN)
    one = jnp.ones((1, 1), jnp.float32)

    return dict(
        w1=w1, b1=b1, mu1=mu, beta1=one, alpha1=one,
        w2=w2, b2=b2, mu2=mu, beta2=one, alpha2=one,
        w3=w3, b3=b3,
    )


def dam_net_reference(x, p):
    """Pure-JAX f32 reference with the original PyTorch module semantics."""
    def mask(mu, beta, alpha):
        return jnp.maximum(jnp.tanh(alpha * alpha * (mu + beta)), 0.0)

    h1 = jnp.maximum(x @ p["w1"] + p["b1"], 0.0) * mask(p["mu1"], p["beta1"], p["alpha1"])
    h2 = jnp.maximum(h1 @ p["w2"] + p["b2"], 0.0) * mask(p["mu2"], p["beta2"], p["alpha2"])
    return h2 @ p["w3"] + p["b3"]


def dam_net_matched_reference(x, params):
    """Pure-JAX path with the kernel's exact bf16/f32 mixed precision."""
    p = _fold_and_pad_params(params)
    x_p = jnp.pad(x, ((0, 0), (0, p["k_pad"] - INPUT_SIZE))).astype(jnp.bfloat16)
    h1 = jnp.maximum(
        jnp.dot(x_p, p["w1"], preferred_element_type=jnp.float32) + p["b1"], 0.0)
    h2 = jnp.maximum(
        jnp.dot(h1.astype(jnp.bfloat16), p["w2"],
                preferred_element_type=jnp.float32) + p["b2"], 0.0)
    out = jnp.dot(h2.astype(jnp.bfloat16), p["w3"],
                  preferred_element_type=jnp.float32) + p["b3"]
    return out[:, :NUM_CLASSES]


if __name__ == "__main__":
    key = jax.random.PRNGKey(0)
    kx, kp = jax.random.split(key)

    B = 8
    x = jax.random.normal(kx, (B, INPUT_SIZE), jnp.float32)
    params = init_params(kp)

    out = jax.block_until_ready(dam_net_forward(x, params))
    assert out.shape == (B, NUM_CLASSES)

    # Tight check vs. a pure-JAX path using the identical bf16/f32 mixed precision.
    matched = dam_net_matched_reference(x, params)
    assert jnp.allclose(out, matched, atol=2e-3, rtol=2e-3), \
        "mismatch vs matched-precision reference"

    # Loose check vs. the original full-f32 module semantics (bf16 matmul error).
    ref = dam_net_reference(x, params)
    assert jnp.allclose(out, ref, atol=1e-1, rtol=1e-1), "mismatch vs f32 reference"

    print("KERNEL_OK")
</pallas_src>

<mosaic_0001>
module attributes {stable_mosaic.version = 11 : i64} {
  func.func @dam_net_kernel(%arg0: i32, %arg1: memref<256x896xbf16, #tpu.memory_space<vmem>>, %arg2: memref<896x128xbf16, #tpu.memory_space<vmem>>, %arg3: memref<1x128xf32, #tpu.memory_space<vmem>>, %arg4: memref<128x128xbf16, #tpu.memory_space<vmem>>, %arg5: memref<1x128xf32, #tpu.memory_space<vmem>>, %arg6: memref<128x128xbf16, #tpu.memory_space<vmem>>, %arg7: memref<1x128xf32, #tpu.memory_space<vmem>>, %arg8: memref<256x128xf32, #tpu.memory_space<vmem>>) attributes {dimension_semantics = [#tpu.dimension_semantics<parallel>], iteration_bounds = array<i64: 1>, scalar_prefetch = 0 : i64, scratch_operands = 0 : i64, tpu.core_type = #tpu.core_type<tc>, window_params = [{transform_indices = @transform_0, window_bounds = array<i64: 256, 896>}, {pipeline_mode = #tpu.pipeline_mode<synchronous>, transform_indices = @transform_1, window_bounds = array<i64: 896, 128>}, {pipeline_mode = #tpu.pipeline_mode<synchronous>, transform_indices = @transform_2, window_bounds = array<i64: 1, 128>}, {pipeline_mode = #tpu.pipeline_mode<synchronous>, transform_indices = @transform_3, window_bounds = array<i64: 128, 128>}, {pipeline_mode = #tpu.pipeline_mode<synchronous>, transform_indices = @transform_4, window_bounds = array<i64: 1, 128>}, {pipeline_mode = #tpu.pipeline_mode<synchronous>, transform_indices = @transform_5, window_bounds = array<i64: 128, 128>}, {pipeline_mode = #tpu.pipeline_mode<synchronous>, transform_indices = @transform_6, window_bounds = array<i64: 1, 128>}, {transform_indices = @transform_7, window_bounds = array<i64: 256, 128>}]} {
    %c0 = arith.constant 0 : index
    %c0_0 = arith.constant 0 : index
    %0 = vector.load %arg1[%c0, %c0_0] : memref<256x896xbf16, #tpu.memory_space<vmem>>, vector<256x896xbf16>
    %c0_1 = arith.constant 0 : index
    %c0_2 = arith.constant 0 : index
    %1 = vector.load %arg2[%c0_1, %c0_2] : memref<896x128xbf16, #tpu.memory_space<vmem>>, vector<896x128xbf16>
    %cst = arith.constant dense<0.000000e+00> : vector<256x128xf32>
    %2 = tpu.matmul %0, %1, %cst {dimension_numbers = #tpu.dot_dimension_numbers<[1], [0], [0], [1], [0, 0, 1, 1], [], []>} : vector<256x896xbf16>, vector<896x128xbf16>, vector<256x128xf32> -> vector<256x128xf32>
    %c0_3 = arith.constant 0 : index
    %c0_4 = arith.constant 0 : index
    %3 = vector.load %arg3[%c0_3, %c0_4] : memref<1x128xf32, #tpu.memory_space<vmem>>, vector<1x128xf32>
    %4 = vector.broadcast %3 : vector<1x128xf32> to vector<256x128xf32>
    %5 = arith.addf %2, %4 : vector<256x128xf32>
    %cst_5 = arith.constant 0.000000e+00 : f32
    %6 = vector.broadcast %cst_5 : f32 to vector<256x128xf32>
    %7 = arith.maximumf %5, %6 : vector<256x128xf32>
    %8 = arith.truncf %7 : vector<256x128xf32> to vector<256x128xbf16>
    %c0_6 = arith.constant 0 : index
    %c0_7 = arith.constant 0 : index
    %9 = vector.load %arg4[%c0_6, %c0_7] : memref<128x128xbf16, #tpu.memory_space<vmem>>, vector<128x128xbf16>
    %cst_8 = arith.constant dense<0.000000e+00> : vector<256x128xf32>
    %10 = tpu.matmul %8, %9, %cst_8 {dimension_numbers = #tpu.dot_dimension_numbers<[1], [0], [0], [1], [0, 0, 1, 1], [], []>} : vector<256x128xbf16>, vector<128x128xbf16>, vector<256x128xf32> -> vector<256x128xf32>
    %c0_9 = arith.constant 0 : index
    %c0_10 = arith.constant 0 : index
    %11 = vector.load %arg5[%c0_9, %c0_10] : memref<1x128xf32, #tpu.memory_space<vmem>>, vector<1x128xf32>
    %12 = vector.broadcast %11 : vector<1x128xf32> to vector<256x128xf32>
    %13 = arith.addf %10, %12 : vector<256x128xf32>
    %cst_11 = arith.constant 0.000000e+00 : f32
    %14 = vector.broadcast %cst_11 : f32 to vector<256x128xf32>
    %15 = arith.maximumf %13, %14 : vector<256x128xf32>
    %16 = arith.truncf %15 : vector<256x128xf32> to vector<256x128xbf16>
    %c0_12 = arith.constant 0 : index
    %c0_13 = arith.constant 0 : index
    %17 = vector.load %arg6[%c0_12, %c0_13] : memref<128x128xbf16, #tpu.memory_space<vmem>>, vector<128x128xbf16>
    %cst_14 = arith.constant dense<0.000000e+00> : vector<256x128xf32>
    %18 = tpu.matmul %16, %17, %cst_14 {dimension_numbers = #tpu.dot_dimension_numbers<[1], [0], [0], [1], [0, 0, 1, 1], [], []>} : vector<256x128xbf16>, vector<128x128xbf16>, vector<256x128xf32> -> vector<256x128xf32>
    %c0_15 = arith.constant 0 : index
    %c0_16 = arith.constant 0 : index
    %19 = vector.load %arg7[%c0_15, %c0_16] : memref<1x128xf32, #tpu.memory_space<vmem>>, vector<1x128xf32>
    %20 = vector.broadcast %19 : vector<1x128xf32> to vector<256x128xf32>
    %21 = arith.addf %18, %20 : vector<256x128xf32>
    %c0_17 = arith.constant 0 : index
    %c0_18 = arith.constant 0 : index
    %22 = vector.load %arg8[%c0_17, %c0_18] : memref<256x128xf32, #tpu.memory_space<vmem>>, vector<256x128xf32>
    tpu.vector_store %arg8[%c0_17, %c0_18], %21 {strides = array<i32>} : memref<256x128xf32, #tpu.memory_space<vmem>>, vector<256x128xf32>,
    return
  }
  func.func @transform_0(%arg0: i32) -> (i32, i32) {
    %c0_i32 = arith.constant 0 : i32
    %c0_i32_0 = arith.constant 0 : i32
    return %arg0, %c0_i32 : i32, i32
  }
  func.func @transform_1(%arg0: i32) -> (i32, i32) {
    %c0_i32 = arith.constant 0 : i32
    %c0_i32_0 = arith.constant 0 : i32
    %c0_i32_1 = arith.constant 0 : i32
    return %c0_i32, %c0_i32_0 : i32, i32
  }
  func.func @transform_2(%arg0: i32) -> (i32, i32) {
    %c0_i32 = arith.constant 0 : i32
    %c0_i32_0 = arith.constant 0 : i32
    %c0_i32_1 = arith.constant 0 : i32
    return %c0_i32, %c0_i32_0 : i32, i32
  }
  func.func @transform_3(%arg0: i32) -> (i32, i32) {
    %c0_i32 = arith.constant 0 : i32
    %c0_i32_0 = arith.constant 0 : i32
    %c0_i32_1 = arith.constant 0 : i32
    return %c0_i32, %c0_i32_0 : i32, i32
  }
  func.func @transform_4(%arg0: i32) -> (i32, i32) {
    %c0_i32 = arith.constant 0 : i32
    %c0_i32_0 = arith.constant 0 : i32
    %c0_i32_1 = arith.constant 0 : i32
    return %c0_i32, %c0_i32_0 : i32, i32
  }
  func.func @transform_5(%arg0: i32) -> (i32, i32) {
    %c0_i32 = arith.constant 0 : i32
    %c0_i32_0 = arith.constant 0 : i32
    %c0_i32_1 = arith.constant 0 : i32
    return %c0_i32, %c0_i32_0 : i32, i32
  }
  func.func @transform_6(%arg0: i32) -> (i32, i32) {
    %c0_i32 = arith.constant 0 : i32
    %c0_i32_0 = arith.constant 0 : i32
    %c0_i32_1 = arith.constant 0 : i32
    return %c0_i32, %c0_i32_0 : i32, i32
  }
  func.func @transform_7(%arg0: i32) -> (i32, i32) {
    %c0_i32 = arith.constant 0 : i32
    %c0_i32_0 = arith.constant 0 : i32
    return %arg0, %c0_i32 : i32, i32
  }
}

</mosaic_0001>

<bundles_post_ra>
// kernel: dam_net_forward.1
= control target key start
LH: loop header
LB: loop body
LE: loop exit
PB: predicated region body
PF: predicated region fallthrough
CT: control target
= control target key end

     0   :  { %s4545_s1 = inlined_call_operand.vmem [shape: bf16[896,128], index: 1, kind: input, shape index: {}]   ;;  %s4546_s0 = inlined_call_operand.vmem [shape: bf16[256,896], index: 0, kind: input, shape index: {}]   ;;  %s4547_s3 = inlined_call_operand.vmem [shape: bf16[128,128], index: 3, kind: input, shape index: {}]   ;;  %s4548_s2 = inlined_call_operand.vmem [shape: f32[1,128], index: 2, kind: input, shape index: {}]   ;;  %s4549_s5 = inlined_call_operand.vmem [shape: bf16[128,128], index: 5, kind: input, shape index: {}]   ;;  %s4550_s4 = inlined_call_operand.vmem [shape: f32[1,128], index: 4, kind: input, shape index: {}]   ;;  %s4551_s6 = inlined_call_operand.vmem [shape: f32[1,128], index: 6, kind: input, shape index: {}]   ;;  %s4552_s7 = inlined_call_operand.vmem [shape: f32[256,128], index: 7, kind: output, shape index: {}]  }
   0x1   :  { %v3181_v0 = vld [vmem:[%s4545_s1 + $0x78] sm:$0xff]   ;;  %v3183_v2 = vld [vmem:[%s4545_s1 + $0x70] sm:$0xff]   ;;  %v3185_v4 = vld [vmem:[%s4545_s1 + $0x68] sm:$0xff]  }
   0x2   :  { %v3182_v1 = vld [vmem:[%s4545_s1 + $0x38] sm:$0xff]   ;;  %2613 = vmatprep.subr.bf16.mxu0 %v3181_v0  ;;  %3165 = vmatprep.subr.bf16.mxu1 %v3181_v0  ;;  %v3184_v3 = vld [vmem:[%s4545_s1 + $0x30] sm:$0xff]   ;;  %v3186_v5 = vld [vmem:[%s4545_s1 + $0x28] sm:$0xff]  }
   0x3   :  { %2614 = vmatpush3.bf16.msra.mxu0 %v3182_v1  ;;  %3173 = vmatpush3.bf16.msra.mxu1 %v3182_v1  ;;  %v3187_v6 = vld [vmem:[%s4545_s1 + $0x60] sm:$0xff]   ;;  %v3189_v8 = vld [vmem:[%s4545_s1 + $0x58] sm:$0xff]   ;;  %v3191_v10 = vld [vmem:[%s4545_s1 + $0x50] sm:$0xff]  }
   0x4   :  { %2615 = vmatprep.subr.bf16.mxu0 %v3183_v2  ;;  %3166 = vmatprep.subr.bf16.mxu1 %v3183_v2  ;;  %v3188_v7 = vld [vmem:[%s4545_s1 + $0x20] sm:$0xff]   ;;  %v3190_v9 = vld [vmem:[%s4545_s1 + $0x18] sm:$0xff]   ;;  %v3192_v13 = vld [vmem:[%s4545_s1 + $0x10] sm:$0xff]  }
   0x5   :  { %v3199_v11 = vld [vmem:[%s4546_s0 + $0x4] ss:$28 sps:$4 sm:$0xff]   ;;  %v3193_v14 = vld [vmem:[%s4545_s1 + $0x48] sm:$0xff]   ;;  %v3203_v18 = vld [vmem:[%s4545_s1 + $0xf8] sm:$0xff]  }
   0x6   :  { %v3202_v12 = vld [vmem:[%s4546_s0 + $0x2a4] ss:$28 sps:$4 sm:$0xff]   ;;  %1218 = vmatprep.mubr.bf16.mxu0 %v3199_v11  ;;  %v3194_v15 = vld [vmem:[%s4545_s1 + $0x8] sm:$0xff]   ;;  %v3204_v21 = vld [vmem:[%s4545_s1 + $0x178] sm:$0xff]  }
   0x7   :  { %2616 = vmatpush3.bf16.msra.mxu0 %v3184_v3  ;;  %3174 = vmatpush3.bf16.msra.mxu1 %v3184_v3  ;;  %v3195_v16 = vld [vmem:[%s4545_s1 + $0x40] sm:$0xff]   ;;  %v3205_v22 = vld [vmem:[%s4545_s1 + $0xb8] sm:$0xff]   ;;  %v3207_v24 = vld [vmem:[%s4545_s1 + $0xf0] sm:$0xff]  }
   0x8   :  { %2617 = vmatprep.subr.bf16.mxu0 %v3185_v4  ;;  %3167 = vmatprep.subr.bf16.mxu1 %v3185_v4  ;;  %v3196_v17 = vld [vmem:[%s4545_s1] sm:$0xff]   ;;  %v3206_v23 = vld [vmem:[%s4545_s1 + $0x138] sm:$0xff]   ;;  %v3218_v27 = vld [vmem:[%s4545_s1 + $0x170] sm:$0xff]  }
   0x9   :  { %1314 = vmatprep.mubr.bf16.mxu1 %v3202_v12  ;;  %v3197_v19 = vld [vmem:[%s4546_s0] ss:$28 sps:$4 sm:$0xff]   ;;  %v3208_v28 = vld [vmem:[%s4545_s1 + $0xb0] sm:$0xff]   ;;  %v3215_v32 = vld [vmem:[%s4545_s1 + $0xe8] sm:$0xff]  }
   0xa   :  { %v3200_v20 = vld [vmem:[%s4546_s0 + $0x2a0] ss:$28 sps:$4 sm:$0xff]   ;;  %v3220_v29 = vld [vmem:[%s4545_s1 + $0x130] sm:$0xff]   ;;  %v3216_v33 = vld [vmem:[%s4545_s1 + $0xa8] sm:$0xff]  }
   0xb   :  { %2618 = vmatpush3.bf16.msra.mxu0 %v3186_v5  ;;  %3175 = vmatpush3.bf16.msra.mxu1 %v3186_v5  ;;  %v3209_v25 = vld [vmem:[%s4546_s0 + $0x3c] ss:$28 sps:$4 sm:$0xff]   ;;  %v3217_v34 = vld [vmem:[%s4545_s1 + $0xe0] sm:$0xff]   ;;  %v3221_v35 = vld [vmem:[%s4546_s0 + $0x74] ss:$28 sps:$4 sm:$0xff]  }
   0xc   :  { %2619 = vmatprep.subr.bf16.mxu0 %v3187_v6  ;;  %3168 = vmatprep.subr.bf16.mxu1 %v3187_v6  ;;  %v3211_v26 = vld [vmem:[%s4546_s0 + $0x2dc] ss:$28 sps:$4 sm:$0xff]   ;;  %v3223_v36 = vld [vmem:[%s4546_s0 + $0x314] ss:$28 sps:$4 sm:$0xff]   ;;  %v3219_v37 = vld [vmem:[%s4545_s1 + $0xa0] sm:$0xff]  }
   0xd   :  { %v3213_v30 = vld [vmem:[%s4546_s0 + $0x38] ss:$28 sps:$4 sm:$0xff]   ;;  %v3225_v39 = vld [vmem:[%s4546_s0 + $0x70] ss:$28 sps:$4 sm:$0xff]   ;;  %v3235_v48 = vld [vmem:[%s4546_s0 + $0xa8] ss:$28 sps:$4 sm:$0xff]  }
   0xe   :  { %v3214_v31 = vld [vmem:[%s4546_s0 + $0x2d8] ss:$28 sps:$4 sm:$0xff]   ;;  %v3226_v40 = vld [vmem:[%s4546_s0 + $0x310] ss:$28 sps:$4 sm:$0xff]   ;;  %v3236_v49 = vld [vmem:[%s4546_s0 + $0x348] ss:$28 sps:$4 sm:$0xff]  }
   0xf   :  { %2620 = vmatpush3.bf16.msra.mxu0 %v3188_v7  ;;  %3176 = vmatpush3.bf16.msra.mxu1 %v3188_v7  ;;  %v3227_v38 = vld [vmem:[%s4545_s1 + $0xd8] sm:$0xff]   ;;  %v3238_v41 = vld [vmem:[%s4545_s1 + $0x168] sm:$0xff]   ;;  %v3229_v43 = vld [vmem:[%s4545_s1 + $0xd0] sm:$0xff]  }
  0x10   :  { %2621 = vmatprep.subr.bf16.mxu0 %v3189_v8  ;;  %3169 = vmatprep.subr.bf16.mxu1 %v3189_v8  ;;  %v3228_v42 = vld [vmem:[%s4545_s1 + $0x98] sm:$0xff]   ;;  %v3240_v44 = vld [vmem:[%s4545_s1 + $0x128] sm:$0xff]   ;;  %v3230_v47 = vld [vmem:[%s4545_s1 + $0x90] sm:$0xff]  }
  0x11   :  { %v3231_v45 = vld [vmem:[%s4546_s0 + $0xac] ss:$28 sps:$4 sm:$0xff]   ;;  %v3250_v52 = vld [vmem:[%s4545_s1 + $0x160] sm:$0xff]   ;;  %v3249_v58 = vld [vmem:[%s4545_s1 + $0x1b8] sm:$0xff]  }
  0x12   :  { %v3233_v46 = vld [vmem:[%s4546_s0 + $0x34c] ss:$28 sps:$4 sm:$0xff]   ;;  %v3251_v53 = vld [vmem:[%s4545_s1 + $0x120] sm:$0xff]   ;;  %v3264_v60 = vld [vmem:[%s4545_s1 + $0x158] sm:$0xff]  }
  0x13   :  { %2622 = vmatpush3.bf16.msra.mxu0 %v3190_v9  ;;  %3177 = vmatpush3.bf16.msra.mxu1 %v3190_v9  ;;  %v3237_v50 = vld [vmem:[%s4545_s1 + $0xc8] sm:$0xff]   ;;  %v3243_v54 = vld [vmem:[%s4546_s0 + $0xe4] ss:$28 sps:$4 sm:$0xff]   ;;  %v3265_v61 = vld [vmem:[%s4545_s1 + $0x118] sm:$0xff]  }
  0x14   :  { %2623 = vmatprep.subr.bf16.mxu0 %v3191_v10  ;;  %3170 = vmatprep.subr.bf16.mxu1 %v3191_v10  ;;  %v3239_v51 = vld [vmem:[%s4545_s1 + $0x88] sm:$0xff]   ;;  %v3241_v55 = vld [vmem:[%s4545_s1 + $0xc0] sm:$0xff]   ;;  %v3252_v63 = vld [vmem:[%s4546_s0 + $0x11c] ss:$28 sps:$4 sm:$0xff]  }
  0x15   :  { %v3247_v56 = vld [vmem:[%s4546_s0 + $0xc] ss:$28 sps:$4 sm:$0xff]   ;;  %v3242_v57 = vld [vmem:[%s4545_s1 + $0x80] sm:$0xff]   ;;  %v3266_v1 = vld [vmem:[%s4545_s1 + $0x1b0] sm:$0xff]  }
  0x16   :  { %v3245_v59 = vld [vmem:[%s4546_s0 + $0x8] ss:$28 sps:$4 sm:$0xff]   ;;  %v3248_v62 = vld [vmem:[%s4546_s0 + $0xe0] ss:$28 sps:$4 sm:$0xff]   ;;  %v3273_v2 = vld [vmem:[%s4545_s1 + $0x150] sm:$0xff]  }
  0x17   :  { %2624 = vmatpush3.bf16.msra.mxu0 %v3192_v13  ;;  %3178 = vmatpush3.bf16.msra.mxu1 %v3192_v13  ;;  %v3254_v0 = vld [vmem:[%s4546_s0 + $0x44] ss:$28 sps:$4 sm:$0xff]   ;;  %v3274_v3 = vld [vmem:[%s4545_s1 + $0x110] sm:$0xff]   ;;  %v3281_v7 = vld [vmem:[%s4545_s1 + $0x1a8] sm:$0xff]  }
  0x18   :  { %2625 = vmatprep.subr.bf16.mxu0 %v3193_v14  ;;  %3171 = vmatprep.subr.bf16.mxu1 %v3193_v14  ;;  %v3256_v4 = vld [vmem:[%s4546_s0 + $0x118] ss:$28 sps:$4 sm:$0xff]   ;;  %v3257_v5 = vld [vmem:[%s4546_s0 + $0x40] ss:$28 sps:$4 sm:$0xff]   ;;  %v3288_v9 = vld [vmem:[%s4545_s1 + $0x148] sm:$0xff]  }
  0x19   :  { %v3258_v6 = vld [vmem:[%s4546_s0 + $0x154] ss:$28 sps:$4 sm:$0xff]   ;;  %v3260_v8 = vld [vmem:[%s4546_s0 + $0x7c] ss:$28 sps:$4 sm:$0xff]   ;;  %v3289_v10 = vld [vmem:[%s4545_s1 + $0x108] sm:$0xff]  }
  0x1a   :  { %v3262_v11 = vld [vmem:[%s4546_s0 + $0x150] ss:$28 sps:$4 sm:$0xff]   ;;  %v3263_v12 = vld [vmem:[%s4546_s0 + $0x78] ss:$28 sps:$4 sm:$0xff]  }
  0x1b   :  { %2626 = vmatpush3.bf16.msra.mxu0 %v3194_v15  ;;  %3179 = vmatpush3.bf16.msra.mxu1 %v3194_v15  ;;  %v3267_v13 = vld [vmem:[%s4546_s0 + $0x18c] ss:$28 sps:$4 sm:$0xff]   ;;  %v3269_v14 = vld [vmem:[%s4546_s0 + $0xb4] ss:$28 sps:$4 sm:$0xff]   ;;  %v3296_v15 = vld [vmem:[%s4545_s1 + $0x1a0] sm:$0xff]  }
  0x1c   :  { %2627 = vmatprep.subr.bf16.mxu0 %v3195_v16  ;;  %3172 = vmatprep.subr.bf16.mxu1 %v3195_v16  ;;  %v3297_v16 = vld [vmem:[%s4545_s1 + $0x140] sm:$0xff]  }
  0x1f   :  { %2628 = vmatpush3.bf16.msra.mxu0 %v3196_v17  ;;  %3180 = vmatpush3.bf16.msra.mxu1 %v3196_v17  ;;  %v3298_v17 = vld [vmem:[%s4545_s1 + $0x100] sm:$0xff]  }
  0x20   :  { %2725 = vmatprep.subr.bf16.mxu1 %v3203_v18  ;;  %2837 = vmatprep.subr.bf16.mxu0 %v3204_v21  ;;  %v3271_v18 = vld [vmem:[%s4546_s0 + $0x188] ss:$28 sps:$4 sm:$0xff]  }
  0x21   :  { %v3277_v21 = vld [vmem:[%s4546_s0 + $0xec] ss:$28 sps:$4 sm:$0xff]  }
  0x22   :  { %1219 = vmatmul.mubr.bf16.vlgmr.msra.gmra.mxu0 %v3197_v19  ;;  %1315 = vmatmul.mubr.bf16.vlgmr.msra.gmra.mxu1 %v3200_v20  ;;  %v3272_v19 = vld [vmem:[%s4546_s0 + $0xb0] ss:$28 sps:$4 sm:$0xff]   ;;  %v3275_v20 = vld [vmem:[%s4546_s0 + $0x1c4] ss:$28 sps:$4 sm:$0xff]  }
  0x23   :  { %2726 = vmatpush3.bf16.msra.mxu1 %v3205_v22  ;;  %2838 = vmatpush3.bf16.msra.mxu0 %v3206_v23  ;;  %v3311_v22 = vld [vmem:[%s4545_s1 + $0x198] sm:$0xff]  }
  0x24   :  { %2727 = vmatprep.subr.bf16.mxu1 %v3207_v24  ;;  %1226 = vmatprep.mubr.bf16.mxu0 %v3209_v25  ;;  %v3279_v23 = vld [vmem:[%s4546_s0 + $0x1c0] ss:$28 sps:$4 sm:$0xff]   ;;  %v3280_v24 = vld [vmem:[%s4546_s0 + $0xe8] ss:$28 sps:$4 sm:$0xff]   ;;  %v3324_v25 = vld [vmem:[%s4545_s1 + $0x190] sm:$0xff]  }
  0x25   :  { %1322 = vmatprep.mubr.bf16.mxu1 %v3211_v26  ;;  %2839 = vmatprep.subr.bf16.mxu0 %v3218_v27  ;;  %v3282_v26 = vld [vmem:[%s4546_s0 + $0x1fc] ss:$28 sps:$4 sm:$0xff]   ;;  %v3284_v27 = vld [vmem:[%s4546_s0 + $0x124] ss:$28 sps:$4 sm:$0xff]  }
  0x27   :  { %2728 = vmatpush3.bf16.msra.mxu1 %v3208_v28  ;;  %2840 = vmatpush3.bf16.msra.mxu0 %v3220_v29  ;;  %v3337_v28 = vld [vmem:[%s4545_s1 + $0x188] sm:$0xff]   ;;  %v3286_v29 = vld [vmem:[%s4546_s0 + $0x1f8] ss:$28 sps:$4 sm:$0xff]  }
  0x28   :  { %2729 = vmatprep.subr.bf16.mxu1 %v3215_v32  ;;  %2841 = vmatprep.subr.bf16.mxu0 %v3238_v41  ;;  %v3292_v32 = vld [vmem:[%s4546_s0 + $0x15c] ss:$28 sps:$4 sm:$0xff]   ;;  %v3309_v41 = vld [vmem:[%s4546_s0 + $0x14] ss:$28 sps:$4 sm:$0xff]  }
  0x2a   :  { %1227 = vmatmul.mubr.bf16.gmra.mxu0 %v3213_v30  ;;  %1323 = vmatmul.mubr.bf16.gmra.mxu1 %v3214_v31  ;;  %v3287_v30 = vld [vmem:[%s4546_s0 + $0x120] ss:$28 sps:$4 sm:$0xff]   ;;  %v3290_v31 = vld [vmem:[%s4546_s0 + $0x234] ss:$28 sps:$4 sm:$0xff]  }
  0x2b   :  { %2730 = vmatpush3.bf16.msra.mxu1 %v3216_v33  ;;  %1234 = vmatprep.mubr.bf16.mxu0 %v3221_v35  ;;  %v3350_v33 = vld [vmem:[%s4545_s1 + $0x180] sm:$0xff]   ;;  %v3295_v35 = vld [vmem:[%s4546_s0 + $0x158] ss:$28 sps:$4 sm:$0xff]  }
  0x2c   :  { %2731 = vmatprep.subr.bf16.mxu1 %v3217_v34  ;;  %1330 = vmatprep.mubr.bf16.mxu1 %v3223_v36  ;;  %v3294_v34 = vld [vmem:[%s4546_s0 + $0x230] ss:$28 sps:$4 sm:$0xff]  }
  0x2d   :  { %2842 = vmatpush3.bf16.msra.mxu0 %v3240_v44  ;;  %v3299_v36 = vld [vmem:[%s4546_s0 + $0x26c] ss:$28 sps:$4 sm:$0xff]   ;;  %v3312_v44 = vld [vmem:[%s4546_s0 + $0x204] ss:$28 sps:$4 sm:$0xff]  }
  0x2e   :  { %2843 = vmatprep.subr.bf16.mxu0 %v3250_v52  ;;  %v3325_v52 = vld [vmem:[%s4546_s0 + $0x274] ss:$28 sps:$4 sm:$0xff]  }
  0x2f   :  { %2732 = vmatpush3.bf16.msra.mxu1 %v3219_v37  ;;  %v3301_v37 = vld [vmem:[%s4546_s0 + $0x194] ss:$28 sps:$4 sm:$0xff]  }
  0x30   :  { %2733 = vmatprep.subr.bf16.mxu1 %v3227_v38  ;;  %v3303_v38 = vld [vmem:[%s4546_s0 + $0x268] ss:$28 sps:$4 sm:$0xff]  }
  0x31   :  { %2844 = vmatpush3.bf16.msra.mxu0 %v3251_v53  ;;  %v3327_v53 = vld [vmem:[%s4546_s0 + $0xbc] ss:$28 sps:$4 sm:$0xff]  }
  0x32   :  { %1235 = vmatmul.mubr.bf16.gmra.mxu0 %v3225_v39  ;;  %1331 = vmatmul.mubr.bf16.gmra.mxu1 %v3226_v40  ;;  %v3304_v39 = vld [vmem:[%s4546_s0 + $0x190] ss:$28 sps:$4 sm:$0xff]  }
  0x33   :  { %2734 = vmatpush3.bf16.msra.mxu1 %v3228_v42  ;;  %1242 = vmatprep.mubr.bf16.mxu0 %v3231_v45  ;;  %v3305_v40 = vld [vmem:[%s4546_s0 + $0x1cc] ss:$28 sps:$4 sm:$0xff]  }
  0x34   :  { %2735 = vmatprep.subr.bf16.mxu1 %v3229_v43  ;;  %1338 = vmatprep.mubr.bf16.mxu1 %v3233_v46  ;;  %v3307_v42 = vld [vmem:[%s4546_s0 + $0x10] ss:$28 sps:$4 sm:$0xff]   ;;  %v3310_v43 = vld [vmem:[%s4546_s0 + $0x1c8] ss:$28 sps:$4 sm:$0xff]   ;;  %v3316_v46 = vld [vmem:[%s4546_s0 + $0x200] ss:$28 sps:$4 sm:$0xff]  }
  0x35   :  { %2845 = vmatprep.subr.bf16.mxu0 %v3264_v60  ;;  %v3314_v45 = vld [vmem:[%s4546_s0 + $0x4c] ss:$28 sps:$4 sm:$0xff]   ;;  %v3338_v60 = vld [vmem:[%s4546_s0 + $0x2e4] ss:$28 sps:$4 sm:$0xff]  }
  0x36   :  { %2846 = vmatpush3.bf16.msra.mxu0 %v3265_v61  ;;  %v3340_v61 = vld [vmem:[%s4546_s0 + $0x12c] ss:$28 sps:$4 sm:$0xff]  }
  0x37   :  { %2736 = vmatpush3.bf16.msra.mxu1 %v3230_v47  ;;  %2847 = vmatprep.subr.bf16.mxu0 %v3273_v2  ;;  %v3317_v47 = vld [vmem:[%s4546_s0 + $0x48] ss:$28 sps:$4 sm:$0xff]   ;;  %v3348_v2 = vld [vmem:[%s4546_s0 + $0x318] ss:$28 sps:$4 sm:$0xff]  }
  0x38   :  { %2737 = vmatprep.subr.bf16.mxu1 %v3237_v50  ;;  %v3322_v50 = vld [vmem:[%s4546_s0 + $0x238] ss:$28 sps:$4 sm:$0xff]  }
  0x3a   :  { %1243 = vmatmul.mubr.bf16.gmra.mxu0 %v3235_v48  ;;  %1339 = vmatmul.mubr.bf16.gmra.mxu1 %v3236_v49  ;;  %v3318_v48 = vld [vmem:[%s4546_s0 + $0x23c] ss:$28 sps:$4 sm:$0xff]   ;;  %v3320_v49 = vld [vmem:[%s4546_s0 + $0x84] ss:$28 sps:$4 sm:$0xff]  }
  0x3b   :  { %2738 = vmatpush3.bf16.msra.mxu1 %v3239_v51  ;;  %1250 = vmatprep.mubr.bf16.mxu0 %v3243_v54  ;;  %v3323_v51 = vld [vmem:[%s4546_s0 + $0x80] ss:$28 sps:$4 sm:$0xff]   ;;  %v3329_v54 = vld [vmem:[%s4546_s0 + $0x270] ss:$28 sps:$4 sm:$0xff]  }
  0x3c   :  { %2739 = vmatprep.subr.bf16.mxu1 %v3241_v55  ;;  %1379 = vmatprep.mubr.bf16.mxu1 %v3247_v56  ;;  %v3330_v55 = vld [vmem:[%s4546_s0 + $0xb8] ss:$28 sps:$4 sm:$0xff]   ;;  %v3331_v56 = vld [vmem:[%s4546_s0 + $0x2ac] ss:$28 sps:$4 sm:$0xff]  }
  0x3d   :  { %2848 = vmatpush3.bf16.msra.mxu0 %v3274_v3  ;;  %v3349_v3 = vld [vmem:[%s4546_s0 + $0x160] ss:$28 sps:$4 sm:$0xff]  }
  0x3e   :  { %2849 = vmatprep.subr.bf16.mxu0 %v3288_v9  ;;  %v3359_v9 = vld [vmem:[%s4546_s0 + $0x18] ss:$28 sps:$4 sm:$0xff]  }
  0x3f   :  { %2740 = vmatpush3.bf16.msra.mxu1 %v3242_v57  ;;  %v3333_v57 = vld [vmem:[%s4546_s0 + $0xf4] ss:$28 sps:$4 sm:$0xff]  }
  0x40   :  { %3021 = vmatprep.subr.bf16.mxu1 %v3249_v58 }
  0x41   :  { %2850 = vmatpush3.bf16.msra.mxu0 %v3289_v10  ;;  %v3360_v10 = vld [vmem:[%s4546_s0 + $0x1d0] ss:$28 sps:$4 sm:$0xff]  }
  0x42   :  { %1251 = vmatmul.mubr.bf16.gmra.mxu0 %v3248_v62  ;;  %1380 = vmatmul.mubr.bf16.vlgmr.msra.gmra.mxu1 %v3245_v59  ;;  %v3336_v59 = vld [vmem:[%s4546_s0 + $0xf0] ss:$28 sps:$4 sm:$0xff]   ;;  %v3342_v62 = vld [vmem:[%s4546_s0 + $0x2e0] ss:$28 sps:$4 sm:$0xff]  }
  0x43   :  { %3022 = vmatpush3.bf16.msra.mxu1 %v3249_v58  ;;  %1258 = vmatprep.mubr.bf16.mxu0 %v3252_v63  ;;  %v3335_v58 = vld [vmem:[%s4546_s0 + $0x2a8] ss:$28 sps:$4 sm:$0xff]  }
  0x44   :  { %1387 = vmatprep.mubr.bf16.mxu1 %v3254_v0  ;;  %3023 = vmatprep.subr.bf16.mxu1 %v3266_v1  ;;  %v3343_v63 = vld [vmem:[%s4546_s0 + $0x128] ss:$28 sps:$4 sm:$0xff]   ;;  %v3344_v0 = vld [vmem:[%s4546_s0 + $0x31c] ss:$28 sps:$4 sm:$0xff]  }
  0x45   :  { %2851 = vmatprep.subr.bf16.mxu0 %v3297_v16  ;;  %v3367_v16 = vld [vmem:[%s4546_s0 + $0x244] ss:$28 sps:$4 sm:$0xff]  }
  0x46   :  { %2852 = vmatpush3.bf16.msra.mxu0 %v3298_v17  ;;  %v3369_v17 = vld [vmem:[%s4546_s0 + $0xf8] ss:$28 sps:$4 sm:$0xff]  }
  0x47   :  { %3024 = vmatpush3.bf16.msra.mxu1 %v3266_v1  ;;  %v3346_v1 = vld [vmem:[%s4546_s0 + $0x164] ss:$28 sps:$4 sm:$0xff]  }
  0x48   :  { %3025 = vmatprep.subr.bf16.mxu1 %v3281_v7 }
  0x4a   :  { %1259 = vmatmul.mubr.bf16.gmra.mxu0 %v3256_v4  ;;  %1388 = vmatmul.mubr.bf16.gmra.mxu1 %v3257_v5  ;;  %v3351_v4 = vld [vmem:[%s4546_s0 + $0x354] ss:$28 sps:$4 sm:$0xff]   ;;  %v3353_v5 = vld [vmem:[%s4546_s0 + $0x19c] ss:$28 sps:$4 sm:$0xff]  }
  0x4b   :  { %1266 = vmatprep.mubr.bf16.mxu0 %v3258_v6  ;;  %1395 = vmatprep.mubr.bf16.mxu1 %v3260_v8  ;;  %v3355_v6 = vld [vmem:[%s4546_s0 + $0x350] ss:$28 sps:$4 sm:$0xff]  }
  0x4c   :  { %3026 = vmatpush3.bf16.msra.mxu1 %v3281_v7  ;;  %v3356_v7 = vld [vmem:[%s4546_s0 + $0x198] ss:$28 sps:$4 sm:$0xff]  }
  0x4d   :  { %3027 = vmatprep.subr.bf16.mxu1 %v3296_v15  ;;  %v3357_v8 = vld [vmem:[%s4546_s0 + $0x1d4] ss:$28 sps:$4 sm:$0xff]  }
  0x50   :  { %3028 = vmatpush3.bf16.msra.mxu1 %v3296_v15  ;;  %v3366_v15 = vld [vmem:[%s4546_s0 + $0xc0] ss:$28 sps:$4 sm:$0xff]  }
  0x51   :  { %3029 = vmatprep.subr.bf16.mxu1 %v3311_v22 }
  0x52   :  { %1267 = vmatmul.mubr.bf16.gmra.mxu0 %v3262_v11  ;;  %1396 = vmatmul.mubr.bf16.gmra.mxu1 %v3263_v12  ;;  %v3361_v11 = vld [vmem:[%s4546_s0 + $0x50] ss:$28 sps:$4 sm:$0xff]  }
  0x53   :  { %1274 = vmatprep.mubr.bf16.mxu0 %v3267_v13  ;;  %1403 = vmatprep.mubr.bf16.mxu1 %v3269_v14  ;;  %v3362_v12 = vld [vmem:[%s4546_s0 + $0x20c] ss:$28 sps:$4 sm:$0xff]  }
  0x54   :  { %3030 = vmatpush3.bf16.msra.mxu1 %v3311_v22  ;;  %v3364_v13 = vld [vmem:[%s4546_s0 + $0x88] ss:$28 sps:$4 sm:$0xff]   ;;  %v3375_v22 = vld [vmem:[%s4546_s0 + $0x278] ss:$28 sps:$4 sm:$0xff]  }
  0x55   :  { %3031 = vmatprep.subr.bf16.mxu1 %v3324_v25  ;;  %v3365_v14 = vld [vmem:[%s4546_s0 + $0x208] ss:$28 sps:$4 sm:$0xff]  }
  0x58   :  { %3032 = vmatpush3.bf16.msra.mxu1 %v3324_v25  ;;  %v3377_v25 = vld [vmem:[%s4546_s0 + $0x2b4] ss:$28 sps:$4 sm:$0xff]  }
  0x59   :  { %3033 = vmatprep.subr.bf16.mxu1 %v3337_v28 }
  0x5a   :  { %1275 = vmatmul.mubr.bf16.gmra.mxu0 %v3271_v18  ;;  %1404 = vmatmul.mubr.bf16.gmra.mxu1 %v3272_v19  ;;  %v3370_v18 = vld [vmem:[%s4546_s0 + $0x240] ss:$28 sps:$4 sm:$0xff]   ;;  %v3371_v19 = vld [vmem:[%s4546_s0 + $0x130] ss:$28 sps:$4 sm:$0xff]  }
  0x5b   :  { %1282 = vmatprep.mubr.bf16.mxu0 %v3275_v20  ;;  %1411 = vmatprep.mubr.bf16.mxu1 %v3277_v21  ;;  %v3372_v20 = vld [vmem:[%s4546_s0 + $0x27c] ss:$28 sps:$4 sm:$0xff]   ;;  %v3374_v21 = vld [vmem:[%s4546_s0 + $0x168] ss:$28 sps:$4 sm:$0xff]  }
  0x5c   :  { %3034 = vmatpush3.bf16.msra.mxu1 %v3337_v28  ;;  %v3380_v28 = vld [vmem:[%s4546_s0 + $0x2b0] ss:$28 sps:$4 sm:$0xff]  }
  0x5d   :  { %3035 = vmatprep.subr.bf16.mxu1 %v3350_v33 }
  0x60   :  { %3036 = vmatpush3.bf16.msra.mxu1 %v3350_v33 }
  0x62   :  { %1283 = vmatmul.mubr.bf16.gmra.mxu0 %v3279_v23  ;;  %1412 = vmatmul.mubr.bf16.gmra.mxu1 %v3280_v24  ;;  %v3376_v23 = vld [vmem:[%s4546_s0 + $0x1a0] ss:$28 sps:$4 sm:$0xff]  }
  0x63   :  { %1290 = vmatprep.mubr.bf16.mxu0 %v3282_v26  ;;  %1419 = vmatprep.mubr.bf16.mxu1 %v3284_v27  ;;  %v3397_v24 = vld [vmem:[%s4547_s3 + $0x38] sm:$0xff]   ;;  %v3398_v27 = vld [vmem:[%s4547_s3 + $0x30] sm:$0xff]  }
  0x64   :  { %v3379_v26 = vld [vmem:[%s4546_s0 + $0x1d8] ss:$28 sps:$4 sm:$0xff]   ;;  %3069 = vmatprep.subr.bf16.mxu1 %v3397_v24 }
  0x6a   :  { %1291 = vmatmul.mubr.bf16.gmra.mxu0 %v3286_v29  ;;  %1420 = vmatmul.mubr.bf16.gmra.mxu1 %v3287_v30  ;;  %v3381_v29 = vld [vmem:[%s4546_s0 + $0x210] ss:$28 sps:$4 sm:$0xff]  }
  0x6b   :  { %1298 = vmatprep.mubr.bf16.mxu0 %v3290_v31  ;;  %1427 = vmatprep.mubr.bf16.mxu1 %v3292_v32  ;;  %v3382_v30 = vld [vmem:[%s4546_s0 + $0x2ec] ss:$28 sps:$4 sm:$0xff]  }
  0x6c   :  { %v3384_v31 = vld [vmem:[%s4546_s0 + $0x248] ss:$28 sps:$4 sm:$0xff]  }
  0x72   :  { %1299 = vmatmul.mubr.bf16.gmra.mxu0 %v3294_v34  ;;  %1428 = vmatmul.mubr.bf16.gmra.mxu1 %v3295_v35  ;;  %v3399_v34 = vld [vmem:[%s4547_s3 + $0x28] sm:$0xff]  }
  0x73   :  { %1306 = vmatprep.mubr.bf16.mxu0 %v3299_v36  ;;  %1435 = vmatprep.mubr.bf16.mxu1 %v3301_v37 }
  0x7a   :  { %1307 = vmatmul.mubr.bf16.gmra.mxu0 %v3303_v38  ;;  %1436 = vmatmul.mubr.bf16.gmra.mxu1 %v3304_v39 }
  0x7b   :  { %1443 = vmatprep.mubr.bf16.mxu1 %v3305_v40  ;;  %1540 = vmatprep.mubr.bf16.mxu0 %v3309_v41  ;;  %v3385_v41 = vld [vmem:[%s4546_s0 + $0x2e8] ss:$28 sps:$4 sm:$0xff]  }
  0x82   :  { %1444 = vmatmul.mubr.bf16.gmra.mxu1 %v3310_v43  ;;  %1541 = vmatmul.mubr.bf16.vlgmr.msra.gmra.mxu0 %v3307_v42  ;;  %v3386_v42 = vld [vmem:[%s4546_s0 + $0x280] ss:$28 sps:$4 sm:$0xff]  }
  0x83   :  { %1451 = vmatprep.mubr.bf16.mxu1 %v3312_v44  ;;  %1548 = vmatprep.mubr.bf16.mxu0 %v3314_v45  ;;  %v3387_v43 = vld [vmem:[%s4546_s0 + $0x324] ss:$28 sps:$4 sm:$0xff]   ;;  %v3389_v44 = vld [vmem:[%s4546_s0 + $0x2b8] ss:$28 sps:$4 sm:$0xff]  }
  0x8a   :  { %1452 = vmatmul.mubr.bf16.gmra.mxu1 %v3316_v46  ;;  %1549 = vmatmul.mubr.bf16.gmra.mxu0 %v3317_v47 }
  0x8b   :  { %1459 = vmatprep.mubr.bf16.mxu1 %v3318_v48  ;;  %1556 = vmatprep.mubr.bf16.mxu0 %v3320_v49  ;;  %v3400_v49 = vld [vmem:[%s4547_s3 + $0x20] sm:$0xff]  }
  0x92   :  { %1460 = vmatmul.mubr.bf16.gmra.mxu1 %v3322_v50  ;;  %1557 = vmatmul.mubr.bf16.gmra.mxu0 %v3323_v51 }
  0x93   :  { %1467 = vmatprep.mubr.bf16.mxu1 %v3325_v52  ;;  %1564 = vmatprep.mubr.bf16.mxu0 %v3327_v53 }
  0x9a   :  { %1468 = vmatmul.mubr.bf16.gmra.mxu1 %v3329_v54  ;;  %1565 = vmatmul.mubr.bf16.gmra.mxu0 %v3330_v55 }
  0x9b   :  { %1475 = vmatprep.mubr.bf16.mxu1 %v3331_v56  ;;  %1572 = vmatprep.mubr.bf16.mxu0 %v3333_v57  ;;  %v3390_v56 = vld [vmem:[%s4546_s0 + $0x320] ss:$28 sps:$4 sm:$0xff]   ;;  %v3391_v57 = vld [vmem:[%s4546_s0 + $0x2f0] ss:$28 sps:$4 sm:$0xff]  }
  0xa2   :  { %1476 = vmatmul.mubr.bf16.gmra.mxu1 %v3335_v58  ;;  %1573 = vmatmul.mubr.bf16.gmra.mxu0 %v3336_v59  ;;  %v3392_v58 = vld [vmem:[%s4546_s0 + $0x35c] ss:$28 sps:$4 sm:$0xff]   ;;  %v3394_v59 = vld [vmem:[%s4546_s0 + $0x328] ss:$28 sps:$4 sm:$0xff]  }
  0xa3   :  { %1483 = vmatprep.mubr.bf16.mxu1 %v3338_v60  ;;  %1580 = vmatprep.mubr.bf16.mxu0 %v3340_v61 }
  0xaa   :  { %1484 = vmatmul.mubr.bf16.gmra.mxu1 %v3342_v62  ;;  %1581 = vmatmul.mubr.bf16.gmra.mxu0 %v3343_v63 }
  0xab   :  { %1491 = vmatprep.mubr.bf16.mxu1 %v3344_v0  ;;  %1588 = vmatprep.mubr.bf16.mxu0 %v3346_v1  ;;  %v3401_v0 = vld [vmem:[%s4547_s3 + $0x18] sm:$0xff]  }
  0xb2   :  { %1492 = vmatmul.mubr.bf16.gmra.mxu1 %v3348_v2  ;;  %1589 = vmatmul.mubr.bf16.gmra.mxu0 %v3349_v3 }
  0xb3   :  { %1499 = vmatprep.mubr.bf16.mxu1 %v3351_v4  ;;  %1596 = vmatprep.mubr.bf16.mxu0 %v3353_v5 }
  0xba   :  { %1500 = vmatmul.mubr.bf16.gmra.mxu1 %v3355_v6  ;;  %1597 = vmatmul.mubr.bf16.gmra.mxu0 %v3356_v7  ;;  %v3395_v7 = vld [vmem:[%s4546_s0 + $0x358] ss:$28 sps:$4 sm:$0xff]  }
  0xbb   :  { %1604 = vmatprep.mubr.bf16.mxu0 %v3357_v8  ;;  %3037 = vmatprep.mubr.bf16.mxu1 %v3359_v9  ;;  %v3396_v8 = vld [vmem:[%s4546_s0 + $0x360] ss:$28 sps:$4 sm:$0xff]  }
  0xc2   :  { %1605 = vmatmul.mubr.bf16.gmra.mxu0 %v3360_v10  ;;  %3038 = vmatmul.mubr.bf16.vlgmr.msra.gmra.mxu1 %v3361_v11 }
  0xc3   :  { %1612 = vmatprep.mubr.bf16.mxu0 %v3362_v12  ;;  %3041 = vmatprep.mubr.bf16.mxu1 %v3364_v13  ;;  %v3402_v13 = vld [vmem:[%s4547_s3 + $0x10] sm:$0xff]  }
  0xc4   :  { %3070 = vmatpush3.bf16.msra.mxu1 %v3397_v24 }
  0xc5   :  { %3071 = vmatprep.subr.bf16.mxu1 %v3398_v27 }
  0xc8   :  { %3072 = vmatpush3.bf16.msra.mxu1 %v3398_v27 }
  0xc9   :  { %3073 = vmatprep.subr.bf16.mxu1 %v3399_v34 }
  0xca   :  { %1613 = vmatmul.mubr.bf16.gmra.mxu0 %v3365_v14  ;;  %3042 = vmatmul.mubr.bf16.gmra.mxu1 %v3366_v15 }
  0xcb   :  { %1620 = vmatprep.mubr.bf16.mxu0 %v3367_v16  ;;  %3045 = vmatprep.mubr.bf16.mxu1 %v3369_v17 }
  0xcc   :  { %3074 = vmatpush3.bf16.msra.mxu1 %v3399_v34 }
  0xcd   :  { %3075 = vmatprep.subr.bf16.mxu1 %v3400_v49 }
  0xd0   :  { %3076 = vmatpush3.bf16.msra.mxu1 %v3400_v49 }
  0xd1   :  { %3077 = vmatprep.subr.bf16.mxu1 %v3401_v0 }
  0xd2   :  { %1621 = vmatmul.mubr.bf16.gmra.mxu0 %v3370_v18  ;;  %3046 = vmatmul.mubr.bf16.gmra.mxu1 %v3371_v19 }
  0xd3   :  { %1628 = vmatprep.mubr.bf16.mxu0 %v3372_v20  ;;  %3049 = vmatprep.mubr.bf16.mxu1 %v3374_v21 }
  0xd4   :  { %3078 = vmatpush3.bf16.msra.mxu1 %v3401_v0 }
  0xd5   :  { %3079 = vmatprep.subr.bf16.mxu1 %v3402_v13 }
  0xd8   :  { %3080 = vmatpush3.bf16.msra.mxu1 %v3402_v13 }
  0xda   :  { %1629 = vmatmul.mubr.bf16.gmra.mxu0 %v3375_v22  ;;  %3050 = vmatmul.mubr.bf16.gmra.mxu1 %v3376_v23  ;;  %v4022_v22 = vld [vmem:[%s4548_s2] ss:$0 sm:$0xff] }
  0xdb   :  { %1636 = vmatprep.mubr.bf16.mxu0 %v3377_v25  ;;  %3053 = vmatprep.mubr.bf16.mxu1 %v3379_v26 }
  0xe2   :  { %v2629_v32 = vpop.f32.mrf.mxu0  ;;  %v2701_v33 = vpop.f32.mrf.mxu1  ;;  %1637 = vmatmul.mubr.bf16.gmra.mxu0 %v3380_v28  ;;  %3054 = vmatmul.mubr.bf16.gmra.mxu1 %v3381_v29 }
  0xe3   :  { %1644 = vmatprep.mubr.bf16.mxu0 %v3382_v30  ;;  %3057 = vmatprep.mubr.bf16.mxu1 %v3384_v31  ;;  %v3403_v31 = vld [vmem:[%s4547_s3 + $0x8] sm:$0xff]  }
  0xe4   :  { %v2630_v35 = vpop.f32.mrf.mxu0  ;;  %v2702_v36 = vpop.f32.mrf.mxu1  ;;  %3081 = vmatprep.subr.bf16.mxu1 %v3403_v31 }
  0xe5   :  { %v3936_v37 = vadd.f32 %v2630_v35, %v2629_v32  ;;  %v3938_v38 = vadd.f32 %v2702_v36, %v2701_v33  ;;  %3082 = vmatpush3.bf16.msra.mxu1 %v3403_v31 }
  0xe6   :  { %v3940_v39 = vpop.f32.mrf.mxu0  ;;  %v3942_v40 = vpop.f32.mrf.mxu1 }
  0xe7   :  { %v1221_v27 = vadd.f32 %v3936_v37, %v4022_v22 }
  0xe8   :  { %v3956_v45 = vpop.f32.mrf.mxu0  ;;  %v3958_v46 = vpop.f32.mrf.mxu1 }
  0xe9   :  { %v2634_v28 = vadd.f32 %v3956_v45, %v3940_v39 }
  0xea   :  { %v2635_v47 = vpop.f32.mrf.mxu0  ;;  %v2707_v48 = vpop.f32.mrf.mxu1  ;;  %1645 = vmatmul.mubr.bf16.gmra.mxu0 %v3385_v41  ;;  %3058 = vmatmul.mubr.bf16.gmra.mxu1 %v3386_v42 }
  0xeb   :  { %1652 = vmatprep.mubr.bf16.mxu0 %v3387_v43  ;;  %3061 = vmatprep.mubr.bf16.mxu1 %v3389_v44  ;;  %v1224_v37 = vadd.f32 %v2634_v28, %v4022_v22  ;;  %v3404_v43 = vld [vmem:[%s4547_s3] sm:$0xff]  }
  0xec   :  { %v2636_v50 = vpop.f32.mrf.mxu0  ;;  %v2708_v51 = vpop.f32.mrf.mxu1  ;;  %3083 = vmatprep.subr.bf16.mxu1 %v3404_v43 }
  0xed   :  { %v3963_v52 = vadd.f32 %v2636_v50, %v2635_v47  ;;  %v3965_v53 = vadd.f32 %v2708_v51, %v2707_v48  ;;  %3084 = vmatpush3.bf16.msra.mxu1 %v3404_v43 }
  0xee   :  { %v3967_v54 = vpop.f32.mrf.mxu0  ;;  %v3969_v55 = vpop.f32.mrf.mxu1 }
  0xef   :  { %v1229_v48 = vadd.f32 %v3963_v52, %v4022_v22 }
  0xf0   :  { %v3983_v60 = vpop.f32.mrf.mxu0  ;;  %v3985_v61 = vpop.f32.mrf.mxu1 }
  0xf1   :  { %v2640_v49 = vadd.f32 %v3983_v60, %v3967_v54 }
  0xf2   :  { %v2641_v62 = vpop.f32.mrf.mxu0  ;;  %v2713_v63 = vpop.f32.mrf.mxu1  ;;  %1653 = vmatmul.mubr.bf16.gmra.mxu0 %v3390_v56  ;;  %3062 = vmatmul.mubr.bf16.gmra.mxu1 %v3391_v57 }
  0xf3   :  { %1660 = vmatprep.mubr.bf16.mxu0 %v3392_v58  ;;  %3065 = vmatprep.mubr.bf16.mxu1 %v3394_v59 }
  0xf4   :  { %v2642_v1 = vpop.f32.mrf.mxu0  ;;  %v2714_v2 = vpop.f32.mrf.mxu1 }
  0xf5   :  { %v3990_v3 = vadd.f32 %v2642_v1, %v2641_v62  ;;  %v3992_v4 = vadd.f32 %v2714_v2, %v2713_v63  ;;  %v1232_v63 = vadd.f32 %v2640_v49, %v4022_v22 }
  0xf6   :  { %v3994_v5 = vpop.f32.mrf.mxu0  ;;  %v3996_v6 = vpop.f32.mrf.mxu1 }
  0xf7   :  { %v1237_v54 = vadd.f32 %v3990_v3, %v4022_v22 }
  0xf8   :  { %v2645_v9 = vpop.f32.mrf.mxu0  ;;  %v4004_v10 = vpop.f32.mrf.mxu1 }
  0xf9   :  { %v2646_v60 = vadd.f32 %v2645_v9, %v3994_v5 }
  0xfa   :  { %v2647_v11 = vpop.f32.mrf.mxu0  ;;  %v2719_v12 = vpop.f32.mrf.mxu1  ;;  %1661 = vmatmul.mubr.bf16.gmra.mxu0 %v3395_v7  ;;  %3066 = vmatmul.mubr.bf16.gmra.mxu1 %v3396_v8 }
  0xfc   :  { %v2648_v14 = vpop.f32.mrf.mxu0  ;;  %v2720_v15 = vpop.f32.mrf.mxu1 }
  0xfd   :  { %v4009_v16 = vadd.f32 %v2648_v14, %v2647_v11  ;;  %v4011_v17 = vadd.f32 %v2720_v15, %v2719_v12 }
  0xfe   :  { %v4013_v18 = vpop.f32.mrf.mxu0  ;;  %v4015_v19 = vpop.f32.mrf.mxu1 }
  0xff   :  { %v1245_v5 = vadd.f32 %v4009_v16, %v4022_v22 }
 0x100   :  { %v2651_v20 = vpop.f32.mrf.mxu0  ;;  %v4017_v21 = vpop.f32.mrf.mxu1 }
 0x101   :  { %v2652_v9 = vadd.f32 %v2651_v20, %v4013_v18 }
 0x102   :  { %v2653_v23 = vpop.f32.mrf.mxu0  ;;  %v2741_v24 = vpop.f32.mrf.mxu1 }
 0x104   :  { %v2654_v25 = vpop.f32.mrf.mxu0  ;;  %v2742_v26 = vpop.f32.mrf.mxu1 }
 0x105   :  { %v4028_v29 = vadd.f32 %v2654_v25, %v2653_v23  ;;  %v2743_v30 = vadd.f32 %v2742_v26, %v2741_v24  ;;  %v1240_v25 = vadd.f32 %v2646_v60, %v4022_v22 }
 0x106   :  { %v4033_v32 = vpop.f32.mrf.mxu0  ;;  %v2744_v33 = vpop.f32.mrf.mxu1 }
 0x107   :  { %v4035_v34 = vadd.f32 %v2743_v30, %v1221_v27  ;;  %v1253_v18 = vadd.f32 %v4028_v29, %v4022_v22 }
 0x108   :  { %v2657_v35 = vpop.f32.mrf.mxu0  ;;  %v2745_v36 = vpop.f32.mrf.mxu1 }
 0x109   :  { %v2746_v41 = vadd.f32 %v2745_v36, %v2744_v33  ;;  %v2658_v20 = vadd.f32 %v2657_v35, %v4033_v32 }
 0x10a   :  { %v2659_v39 = vpop.f32.mrf.mxu0  ;;  %v2747_v42 = vpop.f32.mrf.mxu1 }
 0x10b   :  { %v4041_v44 = vadd.f32 %v2746_v41, %v1224_v37 }
 0x10c   :  { %v2660_v45 = vpop.f32.mrf.mxu0  ;;  %v2748_v47 = vpop.f32.mrf.mxu1 }
 0x10d   :  { %v4047_v50 = vadd.f32 %v2660_v45, %v2659_v39  ;;  %v2749_v51 = vadd.f32 %v2748_v47, %v2747_v42  ;;  %v1248_v45 = vadd.f32 %v2652_v9, %v4022_v22 }
 0x10e   :  { %v2662_v56 = vpop.f32.mrf.mxu0  ;;  %v2750_v57 = vpop.f32.mrf.mxu1 }
 0x10f   :  { %v4049_v58 = vadd.f32 %v2749_v51, %v1229_v48  ;;  %v1261_v35 = vadd.f32 %v4047_v50, %v4022_v22 }
 0x110   :  { %v2663_v59 = vpop.f32.mrf.mxu0  ;;  %v2751_v62 = vpop.f32.mrf.mxu1 }
 0x111   :  { %v2752_v0 = vadd.f32 %v2751_v62, %v2750_v57 }
 0x112   :  { %v2665_v1 = vpop.f32.mrf.mxu0  ;;  %v2753_v2 = vpop.f32.mrf.mxu1 }
 0x113   :  { %v4052_v7 = vadd.f32 %v2752_v0, %v1232_v63 }
 0x114   :  { %v2666_v52 = vpop.f32.mrf.mxu0  ;;  %v2754_v8 = vpop.f32.mrf.mxu1 }
 0x115   :  { %v4057_v11 = vadd.f32 %v2666_v52, %v2665_v1  ;;  %v2755_v12 = vadd.f32 %v2754_v8, %v2753_v2 }
 0x116   :  { %v4059_v13 = vpop.f32.mrf.mxu0  ;;  %v2756_v14 = vpop.f32.mrf.mxu1 }
 0x117   :  { %v4061_v15 = vadd.f32 %v2755_v12, %v1237_v54  ;;  %v1256_v54 = vadd.f32 %v2658_v20, %v4022_v22 }
 0x118   :  { %v2669_v23 = vpop.f32.mrf.mxu0  ;;  %v2757_v24 = vpop.f32.mrf.mxu1 }
 0x119   :  { %v2758_v26 = vadd.f32 %v2757_v24, %v2756_v14 }
 0x11a   :  { %v2671_v27 = vpop.f32.mrf.mxu0  ;;  %v2759_v28 = vpop.f32.mrf.mxu1 }
 0x11b   :  { %v4064_v30 = vadd.f32 %v2758_v26, %v1240_v25  ;;  %v2664_v26 = vadd.f32 %v2663_v59, %v2662_v56  ;;  %v1269_v59 = vadd.f32 %v4057_v11, %v4022_v22 }
 0x11c   :  { %v2672_v3 = vpop.f32.mrf.mxu0  ;;  %v2760_v31 = vpop.f32.mrf.mxu1 }
 0x11d   :  { %v4069_v33 = vadd.f32 %v2672_v3, %v2671_v27  ;;  %v2761_v36 = vadd.f32 %v2760_v31, %v2759_v28 }
 0x11e   :  { %v4071_v37 = vpop.f32.mrf.mxu0  ;;  %v2762_v41 = vpop.f32.mrf.mxu1 }
 0x11f   :  { %v4073_v39 = vadd.f32 %v2761_v36, %v1245_v5 }
 0x120   :  { %v2675_v42 = vpop.f32.mrf.mxu0  ;;  %v2763_v43 = vpop.f32.mrf.mxu1 }
 0x121   :  { %v2764_v47 = vadd.f32 %v2763_v43, %v2762_v41  ;;  %v1264_v41 = vadd.f32 %v2664_v26, %v4022_v22 }
 0x122   :  { %v2677_v48 = vpop.f32.mrf.mxu0  ;;  %v2765_v49 = vpop.f32.mrf.mxu1 }
 0x123   :  { %v4076_v51 = vadd.f32 %v2764_v47, %v1248_v45 }
 0x124   :  { %v2678_v16 = vpop.f32.mrf.mxu0  ;;  %v2766_v57 = vpop.f32.mrf.mxu1 }
 0x125   :  { %v4081_v62 = vadd.f32 %v2678_v16, %v2677_v48  ;;  %v2767_v63 = vadd.f32 %v2766_v57, %v2765_v49  ;;  %v2670_v16 = vadd.f32 %v2669_v23, %v4059_v13  ;;  %v1277_v23 = vadd.f32 %v4069_v33, %v4022_v22 }
 0x126   :  { %v2680_v0 = vpop.f32.mrf.mxu0  ;;  %v2768_v1 = vpop.f32.mrf.mxu1 }
 0x127   :  { %v4083_v2 = vadd.f32 %v2767_v63, %v1253_v18 }
 0x128   :  { %v2681_v52 = vpop.f32.mrf.mxu0  ;;  %v2769_v8 = vpop.f32.mrf.mxu1 }
 0x129   :  { %v4086_v60 = vadd.f32 %v2681_v52, %v2680_v0  ;;  %v2770_v12 = vadd.f32 %v2769_v8, %v2768_v1  ;;  %v1272_v8 = vadd.f32 %v2670_v16, %v4022_v22 }
 0x12a   :  { %v2683_v14 = vpop.f32.mrf.mxu0  ;;  %v2771_v24 = vpop.f32.mrf.mxu1 }
 0x12b   :  { %v4088_v25 = vadd.f32 %v2770_v12, %v1256_v54 }
 0x12c   :  { %v2684_v29 = vpop.f32.mrf.mxu0  ;;  %v2772_v32 = vpop.f32.mrf.mxu1 }
 0x12d   :  { %v4092_v27 = vadd.f32 %v2684_v29, %v2683_v14  ;;  %v2773_v28 = vadd.f32 %v2772_v32, %v2771_v24  ;;  %v2676_v32 = vadd.f32 %v2675_v42, %v4071_v37  ;;  %v1285_v42 = vadd.f32 %v4081_v62, %v4022_v22 }
 0x12e   :  { %v2686_v3 = vpop.f32.mrf.mxu0  ;;  %v2774_v31 = vpop.f32.mrf.mxu1 }
 0x12f   :  { %v4094_v5 = vadd.f32 %v2773_v28, %v1261_v35 }
 0x130   :  { %v2687_v9 = vpop.f32.mrf.mxu0  ;;  %v2775_v36 = vpop.f32.mrf.mxu1 }
 0x131   :  { %v4097_v43 = vadd.f32 %v2687_v9, %v2686_v3  ;;  %v2776_v45 = vadd.f32 %v2775_v36, %v2774_v31 }
 0x132   :  { %v2689_v47 = vpop.f32.mrf.mxu0  ;;  %v2777_v48 = vpop.f32.mrf.mxu1 }
 0x133   :  { %v4099_v49 = vadd.f32 %v2776_v45, %v1264_v41  ;;  %v1280_v41 = vadd.f32 %v2676_v32, %v4022_v22  ;;  %v1293_v32 = vadd.f32 %v4092_v27, %v4022_v22  ;;  %v3407_v27 = vld [vmem:[%s4549_s5 + $0x28] sm:$0xff]  }
 0x134   :  { %v2690_v50 = vpop.f32.mrf.mxu0  ;;  %v2778_v56 = vpop.f32.mrf.mxu1 }
 0x135   :  { %v4104_v57 = vadd.f32 %v2690_v50, %v2689_v47  ;;  %v2779_v18 = vadd.f32 %v2778_v56, %v2777_v48 }
 0x136   :  { %v2692_v20 = vpop.f32.mrf.mxu0  ;;  %v2780_v63 = vpop.f32.mrf.mxu1 }
 0x137   :  { %v4106_v0 = vadd.f32 %v2779_v18, %v1269_v59 }
 0x138   :  { %v2693_v1 = vpop.f32.mrf.mxu0  ;;  %v2781_v52 = vpop.f32.mrf.mxu1 }
 0x139   :  { %v4109_v54 = vadd.f32 %v2693_v1, %v2692_v20  ;;  %v2782_v12 = vadd.f32 %v2781_v52, %v2780_v63 }
 0x13a   :  { %v2695_v14 = vpop.f32.mrf.mxu0  ;;  %v2783_v24 = vpop.f32.mrf.mxu1 }
 0x13b   :  { %v4111_v29 = vadd.f32 %v2782_v12, %v1272_v8  ;;  %v1288_v12 = vadd.f32 %v4086_v60, %v4022_v22  ;;  %v3406_v60 = vld [vmem:[%s4549_s5 + $0x30] sm:$0xff]  }
 0x13c   :  { %v2696_v11 = vpop.f32.mrf.mxu0  ;;  %v2784_v13 = vpop.f32.mrf.mxu1 }
 0x13d   :  { %v4116_v35 = vadd.f32 %v2696_v11, %v2695_v14  ;;  %v2785_v26 = vadd.f32 %v2784_v13, %v2783_v24 }
 0x13e   :  { %v2698_v28 = vpop.f32.mrf.mxu0  ;;  %v2786_v3 = vpop.f32.mrf.mxu1 }
 0x13f   :  { %v4118_v31 = vadd.f32 %v2785_v26, %v1277_v23 }
 0x140   :  { %v2699_v9 = vpop.f32.mrf.mxu0  ;;  %v2787_v36 = vpop.f32.mrf.mxu1 }
 0x141   :  { %v4121_v45 = vadd.f32 %v2699_v9, %v2698_v28  ;;  %v2788_v47 = vadd.f32 %v2787_v36, %v2786_v3 }
 0x142   :  { %v2789_v48 = vpop.f32.mrf.mxu1  ;;  %v2853_v50 = vpop.f32.mrf.mxu0 }
 0x143   :  { %v4123_v56 = vadd.f32 %v2788_v47, %v1280_v41  ;;  %v1296_v47 = vadd.f32 %v4097_v43, %v4022_v22 }
 0x144   :  { %v2790_v33 = vpop.f32.mrf.mxu1  ;;  %v2854_v37 = vpop.f32.mrf.mxu0 }
 0x145   :  { %v2791_v59 = vadd.f32 %v2790_v33, %v2789_v48  ;;  %v2855_v16 = vadd.f32 %v2854_v37, %v2853_v50 }
 0x146   :  { %v2792_v18 = vpop.f32.mrf.mxu1  ;;  %v4127_v20 = vpop.f32.mrf.mxu0 }
 0x147   :  { %v4129_v63 = vadd.f32 %v2791_v59, %v1285_v42  ;;  %v4132_v1 = vadd.f32 %v2855_v16, %v4035_v34  ;;  %v3405_v34 = vld [vmem:[%s4549_s5 + $0x38] sm:$0xff]   ;;  %v3408_v16 = vld [vmem:[%s4549_s5 + $0x20] sm:$0xff]  }
 0x148   :  { %v2793_v52 = vpop.f32.mrf.mxu1  ;;  %v4134_v8 = vpop.f32.mrf.mxu0  ;;  %3117 = vmatprep.subr.bf16.mxu0 %v3405_v34 }
 0x149   :  { %4553 = vst [vmem:[#allocation2_spill] sm:$0xff] %v4129_v63  ;;  %v2794_v14 = vadd.f32 %v2793_v52, %v2792_v18  ;;  %3118 = vmatpush3.bf16.msra.mxu0 %v3405_v34  ;;  %v1301_v18 = vadd.f32 %v4104_v57, %v4022_v22  ;;  %v3409_v34 = vld [vmem:[%s4549_s5 + $0x18] sm:$0xff]  }
 0x14a   :  { %v2795_v24 = vpop.f32.mrf.mxu1  ;;  %v4138_v11 = vpop.f32.mrf.mxu0  ;;  %3119 = vmatprep.subr.bf16.mxu0 %v3406_v60 }
 0x14b   :  { %v4140_v62 = vadd.f32 %v2794_v14, %v1288_v12 }
 0x14c   :  { %v2796_v13 = vpop.f32.mrf.mxu1  ;;  %v4142_v23 = vpop.f32.mrf.mxu0 }
 0x14d   :  { %4554 = vst [vmem:[#allocation3_spill] sm:$0xff] %v4140_v62  ;;  %v2797_v26 = vadd.f32 %v2796_v13, %v2795_v24  ;;  %3120 = vmatpush3.bf16.msra.mxu0 %v3406_v60 }
 0x14e   :  { %v2798_v28 = vpop.f32.mrf.mxu1  ;;  %v4152_v3 = vpop.f32.mrf.mxu0  ;;  %3121 = vmatprep.subr.bf16.mxu0 %v3407_v27 }
 0x14f   :  { %v4154_v9 = vadd.f32 %v2797_v26, %v1293_v32  ;;  %v1304_v32 = vadd.f32 %v4109_v54, %v4022_v22 }
 0x150   :  { %v2799_v36 = vpop.f32.mrf.mxu1  ;;  %v4156_v41 = vpop.f32.mrf.mxu0 }
 0x151   :  { %v2800_v48 = vadd.f32 %v2799_v36, %v2798_v28  ;;  %3122 = vmatpush3.bf16.msra.mxu0 %v3407_v27 }
 0x152   :  { %v2801_v50 = vpop.f32.mrf.mxu1  ;;  %v4163_v33 = vpop.f32.mrf.mxu0  ;;  %3123 = vmatprep.subr.bf16.mxu0 %v3408_v16 }
 0x153   :  { %v4165_v37 = vadd.f32 %v2800_v48, %v1296_v47  ;;  %v3410_v47 = vld [vmem:[%s4549_s5 + $0x10] sm:$0xff]   ;;  %v1309_v48 = vadd.f32 %v4116_v35, %v4022_v22 }
 0x154   :  { %v2802_v42 = vpop.f32.mrf.mxu1  ;;  %v4167_v59 = vpop.f32.mrf.mxu0 }
 0x155   :  { %4555 = vst [vmem:[#allocation4_spill] sm:$0xff] %v4165_v37  ;;  %v2803_v52 = vadd.f32 %v2802_v42, %v2801_v50  ;;  %3124 = vmatpush3.bf16.msra.mxu0 %v3408_v16 }
 0x156   :  { %v2804_v43 = vpop.f32.mrf.mxu1  ;;  %v4174_v12 = vpop.f32.mrf.mxu0  ;;  %3125 = vmatprep.subr.bf16.mxu0 %v3409_v34 }
 0x157   :  { %v4176_v14 = vadd.f32 %v2803_v52, %v1301_v18 }
 0x158   :  { %v2805_v24 = vpop.f32.mrf.mxu1  ;;  %v4178_v13 = vpop.f32.mrf.mxu0 }
 0x159   :  { %4556 = vst [vmem:[#allocation5_spill] sm:$0xff] %v4176_v14  ;;  %v2806_v26 = vadd.f32 %v2805_v24, %v2804_v43  ;;  %3126 = vmatpush3.bf16.msra.mxu0 %v3409_v34  ;;  %v3411_v43 = vld [vmem:[%s4549_s5 + $0x8] sm:$0xff]   ;;  %v1312_v24 = vadd.f32 %v4121_v45, %v4022_v22 }
 0x15a   :  { %v2807_v57 = vpop.f32.mrf.mxu1  ;;  %v4185_v60 = vpop.f32.mrf.mxu0  ;;  %3127 = vmatprep.subr.bf16.mxu0 %v3410_v47 }
 0x15b   :  { %v4187_v28 = vadd.f32 %v2806_v26, %v1304_v32 }
 0x15c   :  { %v2808_v36 = vpop.f32.mrf.mxu1  ;;  %v4189_v27 = vpop.f32.mrf.mxu0 }
 0x15d   :  { %4557 = vst [vmem:[#allocation6_spill] sm:$0xff] %v4187_v28  ;;  %v2809_v50 = vadd.f32 %v2808_v36, %v2807_v57  ;;  %3128 = vmatpush3.bf16.msra.mxu0 %v3410_v47 }
 0x15e   :  { %v2810_v54 = vpop.f32.mrf.mxu1  ;;  %v4196_v42 = vpop.f32.mrf.mxu0  ;;  %3129 = vmatprep.subr.bf16.mxu0 %v3411_v43 }
 0x15f   :  { %v4198_v18 = vadd.f32 %v2809_v50, %v1309_v48  ;;  %v1317_v48 = vadd.f32 %v3938_v38, %v4022_v22  ;;  %v2706_v50 = vadd.f32 %v3958_v46, %v3942_v40  ;;  %v1325_v46 = vadd.f32 %v3965_v53, %v4022_v22 }
 0x160   :  { %v2811_v52 = vpop.f32.mrf.mxu1  ;;  %v4200_v16 = vpop.f32.mrf.mxu0 }
 0x161   :  { %4558 = vst [vmem:[#allocation7_spill] sm:$0xff] %v4198_v18  ;;  %v2812_v32 = vadd.f32 %v2811_v52, %v2810_v54  ;;  %3130 = vmatpush3.bf16.msra.mxu0 %v3411_v43  ;;  %v1320_v47 = vadd.f32 %v2706_v50, %v4022_v22 }
 0x162   :  { %v2813_v35 = vpop.f32.mrf.mxu1  ;;  %v4207_v26 = vpop.f32.mrf.mxu0 }
 0x163   :  { %v4209_v57 = vadd.f32 %v2812_v32, %v1312_v24 }
 0x164   :  { %v2814_v36 = vpop.f32.mrf.mxu1  ;;  %v4211_v34 = vpop.f32.mrf.mxu0 }
 0x165   :  { %4559 = vst [vmem:[#allocation8_spill] sm:$0xff] %v4209_v57  ;;  %v2815_v28 = vadd.f32 %v2814_v36, %v2813_v35 }
 0x166   :  { %v2816_v14 = vpop.f32.mrf.mxu1  ;;  %v4217_v45 = vpop.f32.mrf.mxu0 }
 0x167   :  { %v4219_v54 = vadd.f32 %v2815_v28, %v1317_v48  ;;  %v2712_v28 = vadd.f32 %v3985_v61, %v3969_v55  ;;  %v1333_v55 = vadd.f32 %v3992_v4, %v4022_v22  ;;  %v2718_v61 = vadd.f32 %v4004_v10, %v3996_v6 }
 0x168   :  { %v2817_v52 = vpop.f32.mrf.mxu1  ;;  %v4221_v24 = vpop.f32.mrf.mxu0  ;;  %v1341_v6 = vadd.f32 %v4011_v17, %v4022_v22  ;;  %v2724_v10 = vadd.f32 %v4017_v21, %v4015_v19  ;;  %v2864_v17 = vadd.f32 %v4156_v41, %v4152_v3  ;;  %v2858_v21 = vadd.f32 %v4134_v8, %v4127_v20 }
 0x169   :  { %4560 = vst [vmem:[#allocation9_spill] sm:$0xff] %v4219_v54  ;;  %v2818_v32 = vadd.f32 %v2817_v52, %v2816_v14  ;;  %v1328_v52 = vadd.f32 %v2712_v28, %v4022_v22  ;;  %v2873_v41 = vadd.f32 %v4189_v27, %v4185_v60  ;;  %v2870_v60 = vadd.f32 %v4178_v13, %v4174_v12 }
 0x16a   :  { %v2819_v57 = vpop.f32.mrf.mxu1  ;;  %v4224_v18 = vpop.f32.mrf.mxu0  ;;  %v1546_v20 = vadd.f32 %v2858_v21, %v4041_v44 }
 0x16b   :  { %v4226_v38 = vadd.f32 %v2818_v32, %v1320_v47 }
 0x16c   :  { %v2820_v62 = vpop.f32.mrf.mxu1  ;;  %v4228_v40 = vpop.f32.mrf.mxu0 }
 0x16d   :  { %4561 = vst [vmem:[#allocation10_spill] sm:$0xff] %v4226_v38  ;;  %v2821_v43 = vadd.f32 %v2820_v62, %v2819_v57  ;;  %v2885_v13 = vadd.f32 %v4228_v40, %v4224_v18  ;;  %v2882_v18 = vadd.f32 %v4221_v24, %v4217_v45 }
 0x16e   :  { %v2822_v35 = vpop.f32.mrf.mxu1  ;;  %v4234_v36 = vpop.f32.mrf.mxu0 }
 0x16f   :  { %v4236_v48 = vadd.f32 %v2821_v43, %v1325_v46 }
 0x170   :  { %v2823_v14 = vpop.f32.mrf.mxu1  ;;  %v4238_v50 = vpop.f32.mrf.mxu0 }
 0x171   :  { %4562 = vst [vmem:[#allocation11_spill] sm:$0xff] %v4236_v48  ;;  %v2824_v47 = vadd.f32 %v2823_v14, %v2822_v35  ;;  %v1336_v14 = vadd.f32 %v2718_v61, %v4022_v22  ;;  %v2861_v61 = vadd.f32 %v4142_v23, %v4138_v11 }
 0x172   :  { %v2825_v32 = vpop.f32.mrf.mxu1  ;;  %v4241_v38 = vpop.f32.mrf.mxu0 }
 0x173   :  { %v4243_v54 = vadd.f32 %v2824_v47, %v1328_v52  ;;  %v1551_v11 = vadd.f32 %v2861_v61, %v4049_v58  ;;  %v2867_v58 = vadd.f32 %v4167_v59, %v4163_v33  ;;  %v1567_v33 = vadd.f32 %v2873_v41, %v4073_v39 }
 0x174   :  { %v2826_v53 = vpop.f32.mrf.mxu1  ;;  %v4245_v37 = vpop.f32.mrf.mxu0  ;;  %v1562_v39 = vadd.f32 %v2870_v60, %v4064_v30  ;;  %v2879_v41 = vadd.f32 %v4211_v34, %v4207_v26  ;;  %v1583_v26 = vadd.f32 %v2885_v13, %v4094_v5  ;;  %v1578_v5 = vadd.f32 %v2882_v18, %v4088_v25 }
 0x175   :  { %4563 = vst [vmem:[#allocation12_spill] sm:$0xff] %v4243_v54  ;;  %v2827_v62 = vadd.f32 %v2826_v53, %v2825_v32 }
 0x176   :  { %v2828_v57 = vpop.f32.mrf.mxu1  ;;  %v4251_v46 = vpop.f32.mrf.mxu0 }
 0x177   :  { %v4253_v28 = vadd.f32 %v2827_v62, %v1333_v55 }
 0x178   :  { %v2829_v43 = vpop.f32.mrf.mxu1  ;;  %v4255_v35 = vpop.f32.mrf.mxu0 }
 0x179   :  { %v2830_v52 = vadd.f32 %v2829_v43, %v2828_v57 }
 0x17a   :  { %v2831_v47 = vpop.f32.mrf.mxu1  ;;  %v4258_v54 = vpop.f32.mrf.mxu0 }
 0x17b   :  { %v4260_v48 = vadd.f32 %v2830_v52, %v1336_v14  ;;  %v1344_v14 = vadd.f32 %v2724_v10, %v4022_v22  ;;  %v1554_v22 = vadd.f32 %v2864_v17, %v4052_v7  ;;  %v2876_v7 = vadd.f32 %v4200_v16, %v4196_v42 }
 0x17c   :  { %v2832_v4 = vpop.f32.mrf.mxu1  ;;  %v4262_v63 = vpop.f32.mrf.mxu0  ;;  %v1559_v42 = vadd.f32 %v2867_v58, %v4061_v15  ;;  %v2888_v15 = vadd.f32 %v4238_v50, %v4234_v36  ;;  %v1575_v36 = vadd.f32 %v2879_v41, %v4083_v2 }
 0x17d   :  { %4564 = vst [vmem:[#allocation13_spill] sm:$0xff] %v4260_v48  ;;  %v2833_v32 = vadd.f32 %v2832_v4, %v2831_v47  ;;  %v1570_v16 = vadd.f32 %v2876_v7, %v4076_v51  ;;  %v2897_v24 = vadd.f32 %v4262_v63, %v4258_v54  ;;  %v2894_v63 = vadd.f32 %v4255_v35, %v4251_v46 }
 0x17e   :  { %v2834_v53 = vpop.f32.mrf.mxu1  ;;  %v4268_v55 = vpop.f32.mrf.mxu0  ;;  %v1586_v50 = vadd.f32 %v2888_v15, %v4099_v49 }
 0x17f   :  { %v4272_v62 = vadd.f32 %v2833_v32, %v1341_v6  ;;  %v1594_v15 = vadd.f32 %v2894_v63, %v4111_v29 }
 0x180   :  { %v2835_v57 = vpop.f32.mrf.mxu1  ;;  %v4274_v43 = vpop.f32.mrf.mxu0 }
 0x181   :  { %v2836_v52 = vadd.f32 %v2835_v57, %v2834_v53  ;;  %v2900_v2 = vadd.f32 %v4274_v43, %v4268_v55 }
 0x182   :  { %v4279_v48 = vpop.f32.mrf.mxu0  ;;  %v3039_v19 = vpop.f32.mrf.mxu1 }
 0x183   :  { %v4283_v47 = vadd.f32 %v2836_v52, %v1344_v14  ;;  %v1712_v6 = vadd.f32 %v3039_v19, %v1551_v11  ;;  %v1602_v55 = vadd.f32 %v2900_v2, %v4123_v56 }
 0x184   :  { %v4286_v23 = vpop.f32.mrf.mxu0  ;;  %v1703_v4 = vpop.f32.mrf.mxu1 }
 0x185   :  { %v1704_v32 = vadd.f32 %v1703_v4, %v4132_v1  ;;  %v1832_v57 = vmax.f32 %v1712_v6, 0.0 }
 0x186   :  { %v4289_v10 = vpop.f32.mrf.mxu0  ;;  %v3040_v3 = vpop.f32.mrf.mxu1 }
 0x187   :  { %v1715_v53 = vadd.f32 %v3040_v3, %v1554_v22  ;;  %v1830_v52 = vmax.f32 %v1704_v32, 0.0 }
 0x188   :  { %v4297_v8 = vpop.f32.mrf.mxu0  ;;  %v1706_v61 = vpop.f32.mrf.mxu1 }
 0x189   :  { %v1833_v14 = vmax.f32 %v1715_v53, 0.0  ;;  %v1707_v17 = vadd.f32 %v1706_v61, %v1546_v20 }
 0x18a   :  { %v4303_v27 = vpop.f32.mrf.mxu0  ;;  %v3043_v1 = vpop.f32.mrf.mxu1 }
 0x18b   :  { %v1863_v44 = vpack.c.bf16 %v1833_v14, %v1832_v57  ;;  %v1831_v19 = vmax.f32 %v1707_v17, 0.0  ;;  %v1728_v4 = vadd.f32 %v3043_v1, %v1567_v33 }
 0x18c   :  { %v4306_v59 = vpop.f32.mrf.mxu0  ;;  %v1719_v21 = vpop.f32.mrf.mxu1 }
 0x18d   :  { %v1862_v11 = vpack.c.bf16 %v1831_v19, %v1830_v52  ;;  %v1720_v22 = vadd.f32 %v1719_v21, %v1559_v42  ;;  %v1836_v51 = vmax.f32 %v1728_v4, 0.0  ;;  %v2891_v19 = vadd.f32 %v4245_v37, %v4241_v38 }
 0x18e   :  { %v4310_v6 = vpop.f32.mrf.mxu0  ;;  %v3044_v12 = vpop.f32.mrf.mxu1  ;;  %v1599_v37 = vadd.f32 %v2897_v24, %v4118_v31  ;;  %v2909_v46 = vadd.f32 %v4306_v59, %v4303_v27  ;;  %v2903_v31 = vadd.f32 %v4286_v23, %v4279_v48 }
 0x18f   :  { %v1731_v3 = vadd.f32 %v3044_v12, %v1570_v16  ;;  %3085 = vmatprep.mubr.bf16.mxu1 %v1862_v11  ;;  %v1834_v7 = vmax.f32 %v1720_v22, 0.0 }
 0x190   :  { %v2911_v32 = vpop.f32.mrf.mxu0  ;;  %v1722_v53 = vpop.f32.mrf.mxu1  ;;  %3086 = vmatmul.mubr.bf16.vlgmr.msra.gmra.mxu1 %v1863_v44  ;;  %v1615_v29 = vadd.f32 %v2909_v46, %v4154_v9 }
 0x191   :  { %v1837_v20 = vmax.f32 %v1731_v3, 0.0  ;;  %v1723_v58 = vadd.f32 %v1722_v53, %v1562_v39  ;;  %v1591_v39 = vadd.f32 %v2891_v19, %v4106_v0  ;;  %v2912_v0 = vadd.f32 %v2911_v32, %v4310_v6  ;;  %v4566_v6 = vld [vmem:[#allocation4_spill] sm:$0xff] }
 0x192   :  { %v4321_v40 = vpop.f32.mrf.mxu0  ;;  %v3047_v61 = vpop.f32.mrf.mxu1 }
 0x193   :  { %v1865_v30 = vpack.c.bf16 %v1837_v20, %v1836_v51  ;;  %v1835_v57 = vmax.f32 %v1723_v58, 0.0  ;;  %v1744_v60 = vadd.f32 %v3047_v61, %v1583_v26  ;;  %v2906_v61 = vadd.f32 %v4297_v8, %v4289_v10  ;;  %v4567_v8 = vld [vmem:[#allocation3_spill] sm:$0xff] }
 0x194   :  { %v4324_v34 = vpop.f32.mrf.mxu0  ;;  %v1735_v14 = vpop.f32.mrf.mxu1  ;;  %v1618_v32 = vadd.f32 %v2912_v0, %v4566_v6 }
 0x195   :  { %v1864_v17 = vpack.c.bf16 %v1835_v57, %v1834_v7  ;;  %v1736_v52 = vadd.f32 %v1735_v14, %v1575_v36  ;;  %v1840_v49 = vmax.f32 %v1744_v60, 0.0 }
 0x196   :  { %v4328_v1 = vpop.f32.mrf.mxu0  ;;  %v3048_v45 = vpop.f32.mrf.mxu1 }
 0x197   :  { %v1747_v44 = vadd.f32 %v3048_v45, %v1586_v50  ;;  %3089 = vmatprep.mubr.bf16.mxu1 %v1864_v17  ;;  %v1838_v16 = vmax.f32 %v1736_v52, 0.0  ;;  %v4565_v17 = vld [vmem:[#allocation2_spill] sm:$0xff]  ;;  %v1610_v52 = vadd.f32 %v2906_v61, %v4567_v8 }
 0x198   :  { %v4335_v33 = vpop.f32.mrf.mxu0  ;;  %v1738_v21 = vpop.f32.mrf.mxu1  ;;  %3090 = vmatmul.mubr.bf16.gmra.mxu1 %v1865_v30  ;;  %v1607_v60 = vadd.f32 %v2903_v31, %v4565_v17 }
 0x199   :  { %v1841_v11 = vmax.f32 %v1747_v44, 0.0  ;;  %v1739_v4 = vadd.f32 %v1738_v21, %v1578_v5  ;;  %v2915_v44 = vadd.f32 %v4324_v34, %v4321_v40 }
 0x19a   :  { %v2919_v54 = vpop.f32.mrf.mxu0  ;;  %v3051_v42 = vpop.f32.mrf.mxu1 }
 0x19b   :  { %v1867_v25 = vpack.c.bf16 %v1841_v11, %v1840_v49  ;;  %v1839_v12 = vmax.f32 %v1739_v4, 0.0  ;;  %v1760_v3 = vadd.f32 %v3051_v42, %v1599_v37  ;;  %v2918_v11 = vadd.f32 %v4335_v33, %v4328_v1  ;;  %v4571_v33 = vld [vmem:[#allocation6_spill] sm:$0xff] }
 0x19c   :  { %v2920_v38 = vpop.f32.mrf.mxu0  ;;  %v1751_v13 = vpop.f32.mrf.mxu1 }
 0x19d   :  { %v1866_v22 = vpack.c.bf16 %v1839_v12, %v1838_v16  ;;  %v1752_v35 = vadd.f32 %v1751_v13, %v1591_v39  ;;  %v1844_v58 = vmax.f32 %v1760_v3, 0.0  ;;  %v2921_v45 = vadd.f32 %v2920_v38, %v2919_v54  ;;  %v4569_v13 = vld [vmem:[#allocation5_spill] sm:$0xff]  ;;  %v4570_v3 = vld [vmem:[#allocation8_spill] sm:$0xff] }
 0x19e   :  { %v2922_v43 = vpop.f32.mrf.mxu0  ;;  %v3052_v41 = vpop.f32.mrf.mxu1 }
 0x19f   :  { %v1763_v53 = vadd.f32 %v3052_v41, %v1602_v55  ;;  %3093 = vmatprep.mubr.bf16.mxu1 %v1866_v22  ;;  %v1842_v7 = vmax.f32 %v1752_v35, 0.0  ;;  %v1623_v22 = vadd.f32 %v2915_v44, %v4569_v13  ;;  %v1626_v35 = vadd.f32 %v2918_v11, %v4571_v33  ;;  %v4576_v13 = vld [vmem:[#allocation13_spill] sm:$0xff] }
 0x1a0   :  { %v2923_v51 = vpop.f32.mrf.mxu0  ;;  %v1754_v20 = vpop.f32.mrf.mxu1  ;;  %3094 = vmatmul.mubr.bf16.gmra.mxu1 %v1867_v25  ;;  %v4568_v25 = vld [vmem:[#allocation7_spill] sm:$0xff] }
 0x1a1   :  { %v1845_v56 = vmax.f32 %v1763_v53, 0.0  ;;  %v1755_v18 = vadd.f32 %v1754_v20, %v1594_v15  ;;  %v2924_v19 = vadd.f32 %v2923_v51, %v2922_v43  ;;  %v1631_v12 = vadd.f32 %v2921_v45, %v4568_v25 }
 0x1a2   :  { %v2925_v27 = vpop.f32.mrf.mxu0  ;;  %v3055_v59 = vpop.f32.mrf.mxu1 }
 0x1a3   :  { %v1869_v30 = vpack.c.bf16 %v1845_v56, %v1844_v58  ;;  %v1843_v57 = vmax.f32 %v1755_v18, 0.0  ;;  %v1776_v14 = vadd.f32 %v3055_v59, %v1615_v29  ;;  %v1634_v39 = vadd.f32 %v2924_v19, %v4570_v3 }
 0x1a4   :  { %v2926_v26 = vpop.f32.mrf.mxu0  ;;  %v1767_v48 = vpop.f32.mrf.mxu1 }
 0x1a5   :  { %v1868_v23 = vpack.c.bf16 %v1843_v57, %v1842_v7  ;;  %v1768_v24 = vadd.f32 %v1767_v48, %v1607_v60  ;;  %v1848_v21 = vmax.f32 %v1776_v14, 0.0  ;;  %v2927_v53 = vadd.f32 %v2926_v26, %v2925_v27  ;;  %v4572_v57 = vld [vmem:[#allocation11_spill] sm:$0xff]  ;;  %v4573_v27 = vld [vmem:[#allocation9_spill] sm:$0xff]  ;;  %v4574_v60 = vld [vmem:[#allocation12_spill] sm:$0xff] }
 0x1a6   :  { %v2928_v36 = vpop.f32.mrf.mxu0  ;;  %v3056_v50 = vpop.f32.mrf.mxu1 }
 0x1a7   :  { %v1779_v10 = vadd.f32 %v3056_v50, %v1618_v32  ;;  %3097 = vmatprep.mubr.bf16.mxu1 %v1868_v23  ;;  %v1846_v54 = vmax.f32 %v1768_v24, 0.0  ;;  %v1639_v26 = vadd.f32 %v2927_v53, %v4573_v27 }
 0x1a8   :  { %v2929_v9 = vpop.f32.mrf.mxu0  ;;  %v1770_v5 = vpop.f32.mrf.mxu1  ;;  %3098 = vmatmul.mubr.bf16.gmra.mxu1 %v1869_v30 }
 0x1a9   :  { %v1849_v2 = vmax.f32 %v1779_v10, 0.0  ;;  %v1771_v49 = vadd.f32 %v1770_v5, %v1610_v52  ;;  %v2930_v56 = vadd.f32 %v2929_v9, %v2928_v36  ;;  %v4575_v36 = vld [vmem:[#allocation10_spill] sm:$0xff] }
 0x1aa   :  { %v2931_v4 = vpop.f32.mrf.mxu0  ;;  %v3059_v63 = vpop.f32.mrf.mxu1 }
 0x1ab   :  { %v1871_v42 = vpack.c.bf16 %v1849_v2, %v1848_v21  ;;  %v1847_v16 = vmax.f32 %v1771_v49, 0.0  ;;  %v1792_v34 = vadd.f32 %v3059_v63, %v1631_v12  ;;  %v1642_v10 = vadd.f32 %v2930_v56, %v4575_v36 }
 0x1ac   :  { %v2932_v37 = vpop.f32.mrf.mxu0  ;;  %v1783_v38 = vpop.f32.mrf.mxu1 }
 0x1ad   :  { %v1870_v40 = vpack.c.bf16 %v1847_v16, %v1846_v54  ;;  %v2933_v41 = vadd.f32 %v2932_v37, %v2931_v4  ;;  %v1784_v46 = vadd.f32 %v1783_v38, %v1623_v22  ;;  %v1852_v51 = vmax.f32 %v1792_v34, 0.0 }
 0x1ae   :  { %v2934_v55 = vpop.f32.mrf.mxu0  ;;  %v3060_v43 = vpop.f32.mrf.mxu1 }
 0x1af   :  { %v1795_v1 = vadd.f32 %v3060_v43, %v1634_v39  ;;  %3101 = vmatprep.mubr.bf16.mxu1 %v1870_v40  ;;  %v1850_v59 = vmax.f32 %v1784_v46, 0.0  ;;  %v1647_v29 = vadd.f32 %v2933_v41, %v4572_v57 }
 0x1b0   :  { %v2935_v15 = vpop.f32.mrf.mxu0  ;;  %v1786_v31 = vpop.f32.mrf.mxu1  ;;  %3102 = vmatmul.mubr.bf16.gmra.mxu1 %v1871_v42 }
 0x1b1   :  { %v1853_v20 = vmax.f32 %v1795_v1, 0.0  ;;  %v2936_v0 = vadd.f32 %v2935_v15, %v2934_v55  ;;  %v1787_v58 = vadd.f32 %v1786_v31, %v1626_v35  ;;  %v3412_v31 = vld [vmem:[%s4549_s5] sm:$0xff]  }
 0x1b2   :  { %v2937_v18 = vpop.f32.mrf.mxu0  ;;  %v3063_v61 = vpop.f32.mrf.mxu1  ;;  %3131 = vmatprep.subr.bf16.mxu0 %v3412_v31 }
 0x1b3   :  { %v1873_v7 = vpack.c.bf16 %v1853_v20, %v1852_v51  ;;  %v1851_v30 = vmax.f32 %v1787_v58, 0.0  ;;  %v1808_v17 = vadd.f32 %v3063_v61, %v1647_v29  ;;  %v1650_v6 = vadd.f32 %v2936_v0, %v4574_v60  ;;  %3132 = vmatpush3.bf16.msra.mxu0 %v3412_v31 }
 0x1b4   :  { %v2938_v48 = vpop.f32.mrf.mxu0  ;;  %v1799_v23 = vpop.f32.mrf.mxu1 }
 0x1b5   :  { %v1872_v14 = vpack.c.bf16 %v1851_v30, %v1850_v59  ;;  %v1800_v45 = vadd.f32 %v1799_v23, %v1639_v26  ;;  %v1856_v44 = vmax.f32 %v1808_v17, 0.0  ;;  %v2939_v9 = vadd.f32 %v2938_v48, %v2937_v18 }
 0x1b6   :  { %v2940_v32 = vpop.f32.mrf.mxu0  ;;  %v3064_v50 = vpop.f32.mrf.mxu1 }
 0x1b7   :  { %v1811_v24 = vadd.f32 %v3064_v50, %v1650_v6  ;;  %3105 = vmatprep.mubr.bf16.mxu1 %v1872_v14  ;;  %v1854_v49 = vmax.f32 %v1800_v45, 0.0  ;;  %v1655_v12 = vadd.f32 %v2939_v9, %v4253_v28 }
 0x1b8   :  { %v2941_v8 = vpop.f32.mrf.mxu0  ;;  %v1802_v52 = vpop.f32.mrf.mxu1  ;;  %3106 = vmatmul.mubr.bf16.gmra.mxu1 %v1873_v7 }
 0x1b9   :  { %v1857_v5 = vmax.f32 %v1811_v24, 0.0  ;;  %v1803_v19 = vadd.f32 %v1802_v52, %v1642_v10  ;;  %v2942_v4 = vadd.f32 %v2941_v8, %v2940_v32 }
 0x1ba   :  { %v2943_v21 = vpop.f32.mrf.mxu0  ;;  %v3067_v2 = vpop.f32.mrf.mxu1 }
 0x1bb   :  { %v1875_v11 = vpack.c.bf16 %v1857_v5, %v1856_v44  ;;  %v1855_v63 = vmax.f32 %v1803_v19, 0.0  ;;  %v1658_v22 = vadd.f32 %v2942_v4, %v4576_v13 }
 0x1bc   :  { %v2944_v54 = vpop.f32.mrf.mxu0  ;;  %v1815_v42 = vpop.f32.mrf.mxu1 }
 0x1bd   :  { %v1874_v16 = vpack.c.bf16 %v1855_v63, %v1854_v49  ;;  %v2945_v25 = vadd.f32 %v2944_v54, %v2943_v21  ;;  %v1816_v34 = vadd.f32 %v1815_v42, %v1655_v12 }
 0x1be   :  { %v2946_v37 = vpop.f32.mrf.mxu0  ;;  %v3068_v38 = vpop.f32.mrf.mxu1 }
 0x1bf   :  { %v1663_v40 = vadd.f32 %v2945_v25, %v4272_v62  ;;  %3109 = vmatprep.mubr.bf16.mxu1 %v1874_v16  ;;  %v1858_v46 = vmax.f32 %v1816_v34, 0.0 }
 0x1c0   :  { %v2947_v3 = vpop.f32.mrf.mxu0  ;;  %v1818_v39 = vpop.f32.mrf.mxu1  ;;  %3110 = vmatmul.mubr.bf16.gmra.mxu1 %v1875_v11 }
 0x1c1   :  { %v2948_v55 = vadd.f32 %v2947_v3, %v2946_v37  ;;  %v1819_v43 = vadd.f32 %v1818_v39, %v1658_v22  ;;  %v1824_v41 = vadd.f32 %v3067_v2, %v1663_v40 }
 0x1c3   :  { %v1666_v1 = vadd.f32 %v2948_v55, %v4283_v47  ;;  %v1859_v33 = vmax.f32 %v1819_v43, 0.0  ;;  %v1860_v53 = vmax.f32 %v1824_v41, 0.0  ;;  %v4378_v47 = vld [vmem:[%s4550_s4] ss:$0 sm:$0xff] }
 0x1c5   :  { %v1827_v35 = vadd.f32 %v3068_v38, %v1666_v1  ;;  %v1876_v28 = vpack.c.bf16 %v1859_v33, %v1858_v46 }
 0x1c7   :  { %v1861_v15 = vmax.f32 %v1827_v35, 0.0  ;;  %3113 = vmatprep.mubr.bf16.mxu1 %v1876_v28 }
 0x1c9   :  { %v1877_v62 = vpack.c.bf16 %v1861_v15, %v1860_v53 }
 0x1cb   :  { %3114 = vmatmul.mubr.bf16.gmra.mxu1 %v1877_v62 }
 0x250   :  { %v3087_v51 = vpop.f32.mrf.mxu1 }
 0x251   :  { %v1992_v18 = vadd.f32 %v3087_v51, %v4378_v47 }
 0x252   :  { %v1983_v20 = vpop.f32.mrf.mxu1 }
 0x253   :  { %v1984_v58 = vadd.f32 %v4378_v47, %v1983_v20  ;;  %v2112_v48 = vmax.f32 %v1992_v18, 0.0 }
 0x254   :  { %v3088_v0 = vpop.f32.mrf.mxu1 }
 0x255   :  { %v1995_v56 = vadd.f32 %v3088_v0, %v4378_v47  ;;  %v2110_v57 = vmax.f32 %v1984_v58, 0.0 }
 0x256   :  { %v1986_v61 = vpop.f32.mrf.mxu1 }
 0x257   :  { %v1987_v59 = vadd.f32 %v4378_v47, %v1986_v61  ;;  %v2113_v7 = vmax.f32 %v1995_v56, 0.0 }
 0x258   :  { %v3091_v30 = vpop.f32.mrf.mxu1 }
 0x259   :  { %v2111_v29 = vmax.f32 %v1987_v59, 0.0  ;;  %v2143_v17 = vpack.c.bf16 %v2113_v7, %v2112_v48  ;;  %v2008_v6 = vadd.f32 %v3091_v30, %v4378_v47 }
 0x25a   :  { %v1999_v23 = vpop.f32.mrf.mxu1 }
 0x25b   :  { %v2142_v14 = vpack.c.bf16 %v2111_v29, %v2110_v57  ;;  %v2000_v26 = vadd.f32 %v4378_v47, %v1999_v23  ;;  %v2116_v8 = vmax.f32 %v2008_v6, 0.0 }
 0x25c   :  { %v3092_v27 = vpop.f32.mrf.mxu1 }
 0x25d   :  { %v2011_v60 = vadd.f32 %v3092_v27, %v4378_v47  ;;  %3133 = vmatprep.mubr.bf16.mxu0 %v2142_v14  ;;  %v2114_v36 = vmax.f32 %v2000_v26, 0.0 }
 0x25e   :  { %v2002_v32 = vpop.f32.mrf.mxu1  ;;  %3134 = vmatmul.mubr.bf16.vlgmr.msra.gmra.mxu0 %v2143_v17 }
 0x25f   :  { %v2003_v50 = vadd.f32 %v4378_v47, %v2002_v32  ;;  %v2117_v45 = vmax.f32 %v2011_v60, 0.0 }
 0x260   :  { %v3095_v24 = vpop.f32.mrf.mxu1 }
 0x261   :  { %v2115_v10 = vmax.f32 %v2003_v50, 0.0  ;;  %v2145_v9 = vpack.c.bf16 %v2117_v45, %v2116_v8  ;;  %v2024_v2 = vadd.f32 %v3095_v24, %v4378_v47 }
 0x262   :  { %v2015_v52 = vpop.f32.mrf.mxu1 }
 0x263   :  { %v2144_v44 = vpack.c.bf16 %v2115_v10, %v2114_v36  ;;  %v2016_v19 = vadd.f32 %v4378_v47, %v2015_v52  ;;  %v2120_v16 = vmax.f32 %v2024_v2, 0.0 }
 0x264   :  { %v3096_v5 = vpop.f32.mrf.mxu1 }
 0x265   :  { %v2027_v21 = vadd.f32 %v3096_v5, %v4378_v47  ;;  %3137 = vmatprep.mubr.bf16.mxu0 %v2144_v44  ;;  %v2118_v54 = vmax.f32 %v2016_v19, 0.0 }
 0x266   :  { %v2018_v49 = vpop.f32.mrf.mxu1  ;;  %3138 = vmatmul.mubr.bf16.gmra.mxu0 %v2145_v9 }
 0x267   :  { %v2019_v11 = vadd.f32 %v4378_v47, %v2018_v49  ;;  %v2121_v4 = vmax.f32 %v2027_v21, 0.0 }
 0x268   :  { %v3099_v63 = vpop.f32.mrf.mxu1 }
 0x269   :  { %v2119_v42 = vmax.f32 %v2019_v11, 0.0  ;;  %v2147_v37 = vpack.c.bf16 %v2121_v4, %v2120_v16  ;;  %v2040_v13 = vadd.f32 %v3099_v63, %v4378_v47 }
 0x26a   :  { %v2031_v25 = vpop.f32.mrf.mxu1 }
 0x26b   :  { %v2146_v12 = vpack.c.bf16 %v2119_v42, %v2118_v54  ;;  %v2032_v40 = vadd.f32 %v4378_v47, %v2031_v25  ;;  %v2124_v46 = vmax.f32 %v2040_v13, 0.0 }
 0x26c   :  { %v3100_v38 = vpop.f32.mrf.mxu1 }
 0x26d   :  { %v2043_v34 = vadd.f32 %v3100_v38, %v4378_v47  ;;  %3141 = vmatprep.mubr.bf16.mxu0 %v2146_v12  ;;  %v2122_v43 = vmax.f32 %v2032_v40, 0.0 }
 0x26e   :  { %v2034_v22 = vpop.f32.mrf.mxu1  ;;  %3142 = vmatmul.mubr.bf16.gmra.mxu0 %v2147_v37 }
 0x26f   :  { %v2035_v3 = vadd.f32 %v4378_v47, %v2034_v22  ;;  %v2125_v39 = vmax.f32 %v2043_v34, 0.0 }
 0x270   :  { %v3103_v55 = vpop.f32.mrf.mxu1 }
 0x271   :  { %v2123_v41 = vmax.f32 %v2035_v3, 0.0  ;;  %v2149_v35 = vpack.c.bf16 %v2125_v39, %v2124_v46  ;;  %v2056_v62 = vadd.f32 %v3103_v55, %v4378_v47  ;;  %v4415_v3 = vld [vmem:[%s4551_s6] ss:$0 sm:$0xff] }
 0x272   :  { %v2047_v1 = vpop.f32.mrf.mxu1 }
 0x273   :  { %v2148_v33 = vpack.c.bf16 %v2123_v41, %v2122_v43  ;;  %v2048_v53 = vadd.f32 %v4378_v47, %v2047_v1  ;;  %v2128_v18 = vmax.f32 %v2056_v62, 0.0 }
 0x274   :  { %v3104_v28 = vpop.f32.mrf.mxu1 }
 0x275   :  { %v2059_v15 = vadd.f32 %v3104_v28, %v4378_v47  ;;  %3145 = vmatprep.mubr.bf16.mxu0 %v2148_v33  ;;  %v2126_v58 = vmax.f32 %v2048_v53, 0.0 }
 0x276   :  { %v2050_v31 = vpop.f32.mrf.mxu1  ;;  %3146 = vmatmul.mubr.bf16.gmra.mxu0 %v2149_v35 }
 0x277   :  { %v2051_v51 = vadd.f32 %v4378_v47, %v2050_v31  ;;  %v2129_v20 = vmax.f32 %v2059_v15, 0.0 }
 0x278   :  { %v3107_v0 = vpop.f32.mrf.mxu1 }
 0x279   :  { %v2127_v56 = vmax.f32 %v2051_v51, 0.0  ;;  %v2151_v7 = vpack.c.bf16 %v2129_v20, %v2128_v18  ;;  %v2072_v48 = vadd.f32 %v3107_v0, %v4378_v47 }
 0x27a   :  { %v2063_v61 = vpop.f32.mrf.mxu1 }
 0x27b   :  { %v2150_v59 = vpack.c.bf16 %v2127_v56, %v2126_v58  ;;  %v2064_v57 = vadd.f32 %v4378_v47, %v2063_v61  ;;  %v2132_v6 = vmax.f32 %v2072_v48, 0.0 }
 0x27c   :  { %v3108_v30 = vpop.f32.mrf.mxu1 }
 0x27d   :  { %v2075_v29 = vadd.f32 %v3108_v30, %v4378_v47  ;;  %3149 = vmatprep.mubr.bf16.mxu0 %v2150_v59  ;;  %v2130_v26 = vmax.f32 %v2064_v57, 0.0 }
 0x27e   :  { %v2066_v23 = vpop.f32.mrf.mxu1  ;;  %3150 = vmatmul.mubr.bf16.gmra.mxu0 %v2151_v7 }
 0x27f   :  { %v2067_v14 = vadd.f32 %v4378_v47, %v2066_v23  ;;  %v2133_v17 = vmax.f32 %v2075_v29, 0.0 }
 0x280   :  { %v3111_v27 = vpop.f32.mrf.mxu1 }
 0x281   :  { %v2131_v60 = vmax.f32 %v2067_v14, 0.0  ;;  %v2153_v45 = vpack.c.bf16 %v2133_v17, %v2132_v6  ;;  %v2088_v8 = vadd.f32 %v3111_v27, %v4378_v47 }
 0x282   :  { %v2079_v32 = vpop.f32.mrf.mxu1 }
 0x283   :  { %v2152_v50 = vpack.c.bf16 %v2131_v60, %v2130_v26  ;;  %v2080_v36 = vadd.f32 %v4378_v47, %v2079_v32  ;;  %v2136_v21 = vmax.f32 %v2088_v8, 0.0 }
 0x284   :  { %v3112_v24 = vpop.f32.mrf.mxu1 }
 0x285   :  { %v2091_v10 = vadd.f32 %v3112_v24, %v4378_v47  ;;  %3153 = vmatprep.mubr.bf16.mxu0 %v2152_v50  ;;  %v2134_v5 = vmax.f32 %v2080_v36, 0.0 }
 0x286   :  { %v2082_v52 = vpop.f32.mrf.mxu1  ;;  %3154 = vmatmul.mubr.bf16.gmra.mxu0 %v2153_v45 }
 0x287   :  { %v2083_v44 = vadd.f32 %v4378_v47, %v2082_v52  ;;  %v2137_v9 = vmax.f32 %v2091_v10, 0.0 }
 0x289   :  { %v2135_v19 = vmax.f32 %v2083_v44, 0.0  ;;  %v2155_v11 = vpack.c.bf16 %v2137_v9, %v2136_v21 }
 0x28b   :  { %v2154_v2 = vpack.c.bf16 %v2135_v19, %v2134_v5  ;;  %v3115_v49 = vpop.f32.mrf.mxu1 }
 0x28c   :  { %v2104_v16 = vadd.f32 %v3115_v49, %v4378_v47 }
 0x28d   :  { %v2095_v4 = vpop.f32.mrf.mxu1  ;;  %3157 = vmatprep.mubr.bf16.mxu0 %v2154_v2 }
 0x28e   :  { %3158 = vmatmul.mubr.bf16.gmra.mxu0 %v2155_v11  ;;  %v2096_v54 = vadd.f32 %v4378_v47, %v2095_v4  ;;  %v2140_v34 = vmax.f32 %v2104_v16, 0.0 }
 0x28f   :  { %v3116_v63 = vpop.f32.mrf.mxu1 }
 0x290   :  { %v2107_v42 = vadd.f32 %v3116_v63, %v4378_v47  ;;  %v2138_v38 = vmax.f32 %v2096_v54, 0.0 }
 0x291   :  { %v2098_v25 = vpop.f32.mrf.mxu1 }
 0x292   :  { %v2099_v12 = vadd.f32 %v4378_v47, %v2098_v25  ;;  %v2141_v37 = vmax.f32 %v2107_v42, 0.0 }
 0x294   :  { %v2139_v40 = vmax.f32 %v2099_v12, 0.0  ;;  %v2157_v22 = vpack.c.bf16 %v2141_v37, %v2140_v34 }
 0x296   :  { %v2156_v13 = vpack.c.bf16 %v2139_v40, %v2138_v38 }
 0x298   :  { %3161 = vmatprep.mubr.bf16.mxu0 %v2156_v13 }
 0x299   :  { %3162 = vmatmul.mubr.bf16.gmra.mxu0 %v2157_v22 }
 0x31e   :  { %v3135_v39 = vpop.f32.mrf.mxu0 }
 0x31f   :  { %v2272_v55 = vadd.f32 %v3135_v39, %v4415_v3 }
 0x320   :  { %v2263_v43 = vpop.f32.mrf.mxu0 }
 0x321   :  { %2392 = vst [vmem:[%s4552_s7 + $0x10] sm:$0xff] %v2272_v55  ;;  %v2264_v47 = vadd.f32 %v4415_v3, %v2263_v43 }
 0x322   :  { %v3136_v41 = vpop.f32.mrf.mxu0 }
 0x323   :  { %2390 = vst [vmem:[%s4552_s7] sm:$0xff] %v2264_v47  ;;  %v2275_v46 = vadd.f32 %v3136_v41, %v4415_v3 }
 0x324   :  { %v2266_v1 = vpop.f32.mrf.mxu0 }
 0x325   :  { %2393 = vst [vmem:[%s4552_s7 + $0x18] sm:$0xff] %v2275_v46  ;;  %v2267_v33 = vadd.f32 %v4415_v3, %v2266_v1 }
 0x326   :  { %v3139_v35 = vpop.f32.mrf.mxu0 }
 0x327   :  { %2391 = vst [vmem:[%s4552_s7 + $0x8] sm:$0xff] %v2267_v33  ;;  %v2288_v28 = vadd.f32 %v3139_v35, %v4415_v3 }
 0x328   :  { %v2279_v53 = vpop.f32.mrf.mxu0 }
 0x329   :  { %2396 = vst [vmem:[%s4552_s7 + $0x30] sm:$0xff] %v2288_v28  ;;  %v2280_v15 = vadd.f32 %v4415_v3, %v2279_v53 }
 0x32a   :  { %v3140_v62 = vpop.f32.mrf.mxu0 }
 0x32b   :  { %2394 = vst [vmem:[%s4552_s7 + $0x20] sm:$0xff] %v2280_v15  ;;  %v2291_v31 = vadd.f32 %v3140_v62, %v4415_v3 }
 0x32c   :  { %v2282_v51 = vpop.f32.mrf.mxu0 }
 0x32d   :  { %2397 = vst [vmem:[%s4552_s7 + $0x38] sm:$0xff] %v2291_v31  ;;  %v2283_v20 = vadd.f32 %v4415_v3, %v2282_v51 }
 0x32e   :  { %v3143_v0 = vpop.f32.mrf.mxu0 }
 0x32f   :  { %2395 = vst [vmem:[%s4552_s7 + $0x28] sm:$0xff] %v2283_v20  ;;  %v2304_v58 = vadd.f32 %v3143_v0, %v4415_v3 }
 0x330   :  { %v2295_v56 = vpop.f32.mrf.mxu0 }
 0x331   :  { %2400 = vst [vmem:[%s4552_s7 + $0x50] sm:$0xff] %v2304_v58  ;;  %v2296_v18 = vadd.f32 %v4415_v3, %v2295_v56 }
 0x332   :  { %v3144_v61 = vpop.f32.mrf.mxu0 }
 0x333   :  { %2398 = vst [vmem:[%s4552_s7 + $0x40] sm:$0xff] %v2296_v18  ;;  %v2307_v59 = vadd.f32 %v3144_v61, %v4415_v3 }
 0x334   :  { %v2298_v7 = vpop.f32.mrf.mxu0 }
 0x335   :  { %2401 = vst [vmem:[%s4552_s7 + $0x58] sm:$0xff] %v2307_v59  ;;  %v2299_v30 = vadd.f32 %v4415_v3, %v2298_v7 }
 0x336   :  { %v3147_v57 = vpop.f32.mrf.mxu0 }
 0x337   :  { %2399 = vst [vmem:[%s4552_s7 + $0x48] sm:$0xff] %v2299_v30  ;;  %v2320_v29 = vadd.f32 %v3147_v57, %v4415_v3 }
 0x338   :  { %v2311_v48 = vpop.f32.mrf.mxu0 }
 0x339   :  { %2404 = vst [vmem:[%s4552_s7 + $0x70] sm:$0xff] %v2320_v29  ;;  %v2312_v23 = vadd.f32 %v4415_v3, %v2311_v48 }
 0x33a   :  { %v3148_v14 = vpop.f32.mrf.mxu0 }
 0x33b   :  { %2402 = vst [vmem:[%s4552_s7 + $0x60] sm:$0xff] %v2312_v23  ;;  %v2323_v17 = vadd.f32 %v3148_v14, %v4415_v3 }
 0x33c   :  { %v2314_v27 = vpop.f32.mrf.mxu0 }
 0x33d   :  { %2405 = vst [vmem:[%s4552_s7 + $0x78] sm:$0xff] %v2323_v17  ;;  %v2315_v26 = vadd.f32 %v4415_v3, %v2314_v27 }
 0x33e   :  { %v3151_v60 = vpop.f32.mrf.mxu0 }
 0x33f   :  { %2403 = vst [vmem:[%s4552_s7 + $0x68] sm:$0xff] %v2315_v26  ;;  %v2336_v6 = vadd.f32 %v3151_v60, %v4415_v3 }
 0x340   :  { %v2327_v32 = vpop.f32.mrf.mxu0 }
 0x341   :  { %2408 = vst [vmem:[%s4552_s7 + $0x90] sm:$0xff] %v2336_v6  ;;  %v2328_v50 = vadd.f32 %v4415_v3, %v2327_v32 }
 0x342   :  { %v3152_v45 = vpop.f32.mrf.mxu0 }
 0x343   :  { %2406 = vst [vmem:[%s4552_s7 + $0x80] sm:$0xff] %v2328_v50  ;;  %v2339_v24 = vadd.f32 %v3152_v45, %v4415_v3 }
 0x344   :  { %v2330_v36 = vpop.f32.mrf.mxu0 }
 0x345   :  { %2409 = vst [vmem:[%s4552_s7 + $0x98] sm:$0xff] %v2339_v24  ;;  %v2331_v10 = vadd.f32 %v4415_v3, %v2330_v36 }
 0x346   :  { %v3155_v8 = vpop.f32.mrf.mxu0 }
 0x347   :  { %2407 = vst [vmem:[%s4552_s7 + $0x88] sm:$0xff] %v2331_v10  ;;  %v2352_v52 = vadd.f32 %v3155_v8, %v4415_v3 }
 0x348   :  { %v2343_v44 = vpop.f32.mrf.mxu0 }
 0x349   :  { %2412 = vst [vmem:[%s4552_s7 + $0xb0] sm:$0xff] %v2352_v52  ;;  %v2344_v9 = vadd.f32 %v4415_v3, %v2343_v44 }
 0x34a   :  { %v3156_v5 = vpop.f32.mrf.mxu0 }
 0x34b   :  { %2410 = vst [vmem:[%s4552_s7 + $0xa0] sm:$0xff] %v2344_v9  ;;  %v2355_v19 = vadd.f32 %v3156_v5, %v4415_v3 }
 0x34c   :  { %v2346_v21 = vpop.f32.mrf.mxu0 }
 0x34d   :  { %2413 = vst [vmem:[%s4552_s7 + $0xb8] sm:$0xff] %v2355_v19  ;;  %v2347_v2 = vadd.f32 %v4415_v3, %v2346_v21 }
 0x34e   :  { %v3159_v49 = vpop.f32.mrf.mxu0 }
 0x34f   :  { %2411 = vst [vmem:[%s4552_s7 + $0xa8] sm:$0xff] %v2347_v2  ;;  %v2368_v11 = vadd.f32 %v3159_v49, %v4415_v3 }
 0x350   :  { %v2359_v4 = vpop.f32.mrf.mxu0 }
 0x351   :  { %2416 = vst [vmem:[%s4552_s7 + $0xd0] sm:$0xff] %v2368_v11  ;;  %v2360_v63 = vadd.f32 %v4415_v3, %v2359_v4 }
 0x352   :  { %v3160_v54 = vpop.f32.mrf.mxu0 }
 0x353   :  { %2414 = vst [vmem:[%s4552_s7 + $0xc0] sm:$0xff] %v2360_v63  ;;  %v2371_v42 = vadd.f32 %v3160_v54, %v4415_v3 }
 0x354   :  { %v2362_v16 = vpop.f32.mrf.mxu0 }
 0x355   :  { %2417 = vst [vmem:[%s4552_s7 + $0xd8] sm:$0xff] %v2371_v42  ;;  %v2363_v25 = vadd.f32 %v4415_v3, %v2362_v16 }
 0x357   :  { %2415 = vst [vmem:[%s4552_s7 + $0xc8] sm:$0xff] %v2363_v25 }
 0x359   :  { %v3163_v12 = vpop.f32.mrf.mxu0 }
 0x35a   :  { %v2384_v37 = vadd.f32 %v3163_v12, %v4415_v3 }
 0x35b   :  { %v2375_v38 = vpop.f32.mrf.mxu0 }
 0x35c   :  { %2420 = vst [vmem:[%s4552_s7 + $0xf0] sm:$0xff] %v2384_v37  ;;  %v2376_v40 = vadd.f32 %v4415_v3, %v2375_v38 }
 0x35d   :  { %v3164_v34 = vpop.f32.mrf.mxu0 }
 0x35e   :  { %2418 = vst [vmem:[%s4552_s7 + $0xe0] sm:$0xff] %v2376_v40  ;;  %v2387_v13 = vadd.f32 %v3164_v34, %v4415_v3 }
 0x35f   :  { %v2378_v22 = vpop.f32.mrf.mxu0 }
 0x360   :  { %2421 = vst [vmem:[%s4552_s7 + $0xf8] sm:$0xff] %v2387_v13  ;;  %v2379_v39 = vadd.f32 %v4415_v3, %v2378_v22 }
 0x362   :  { %2419 = vst [vmem:[%s4552_s7 + $0xe8] sm:$0xff] %v2379_v39 }

</bundles_post_ra>
